<compile_context>
chip_gen: v7x
topology: tpu7x:2x2x1
jax: 0.10.0
libtpu: 0.0.40
codegen_flags: <defaults>
</compile_context>

<pallas_src>
import functools

import jax
import jax.numpy as jnp
from jax import lax
from jax.experimental import pallas as pl
from jax.experimental.pallas import tpu as pltpu


def frame_nce_kernel(ctx_ref, qry_ref, row_out, col_out, nom_out,
                     row_m, row_s, col_sc, nom_sc,
                     *, B, F, TJ, nt_p):
    """One grid step = one tile of TN = TJ*F columns of the (B, B*F) scores."""
    p = pl.program_id(0)          # parallel slice (v7x megacore axis)
    t = pl.program_id(1)          # column tile within the slice (sequential)
    TN = TJ * F
    neg_inf = jnp.float32(-jnp.inf)

    @pl.when(t == 0)
    def _init():
        row_m[...] = jnp.full_like(row_m, neg_inf)
        row_s[...] = jnp.zeros_like(row_s)
        col_sc[...] = jnp.full_like(col_sc, neg_inf)
        nom_sc[...] = jnp.full_like(nom_sc, neg_inf)

    ctx = ctx_ref[...]
    qry = qry_ref[...]

    # Scores for this tile: (B, TN).  Contract feature dims directly (no .T).
    x = lax.dot_general(ctx, qry,
                        dimension_numbers=(((1,), (1,)), ((), ())),
                        preferred_element_type=jnp.float32)

    # ---- row term: streaming logsumexp over column tiles (all B rows).
    m_prev = row_m[...]                                          # (B, 1)
    m_new = jnp.maximum(m_prev, jnp.max(x, axis=1, keepdims=True))
    exp_row = jnp.exp(x - m_new)                                 # (B, TN), <= 1
    # Lane-sum on the (idle) MXU instead of the XLU: exp_row @ ones((TN, 1)).
    row_sum = lax.dot_general(exp_row, jnp.ones((TN, 1), jnp.float32),
                              dimension_numbers=(((1,), (0,)), ((), ())),
                              preferred_element_type=jnp.float32)  # (B, 1)
    row_s[...] = row_s[...] * jnp.exp(m_prev - m_new) + row_sum
    row_m[...] = m_new

    # ---- rows owned by this tile: global rows [row0, row0 + TJ).
    row0 = pl.multiple_of((p * nt_p + t) * TJ, 8)

    # ---- column (transposed) term for the owned rows only.
    # Stage 1: per-column max (VPU) and per-column sum over all B rows (MXU).
    cmax = jnp.max(x, axis=0, keepdims=True)                     # (1, TN)
    exp_col = jnp.exp(x - cmax)                                  # (B, TN), <= 1
    csum = lax.dot_general(jnp.ones((1, B), jnp.float32), exp_col,
                           dimension_numbers=(((1,), (0,)), ((), ())),
                           preferred_element_type=jnp.float32)   # (1, TN)
    # Stage 2: merge each owned row's F-wide column block; only (TJ, TN) work.
    r_ids = lax.broadcasted_iota(jnp.int32, (TJ, TN), 0)
    c_ids = lax.broadcasted_iota(jnp.int32, (TJ, TN), 1)
    dmask = (c_ids >= r_ids * F) & (c_ids < (r_ids + 1) * F)     # block-diagonal
    cmax_m = jnp.where(dmask, jnp.broadcast_to(cmax, (TJ, TN)), neg_inf)
    blk_max = jnp.max(cmax_m, axis=1, keepdims=True)             # (TJ, 1), finite
    # exp(-inf - finite) = 0, so masked columns contribute exactly 0 (no inf).
    blk_sum = jnp.sum(jnp.broadcast_to(csum, (TJ, TN)) * jnp.exp(cmax_m - blk_max),
                      axis=1, keepdims=True)                     # (TJ, 1), >= 1
    col_sc[pl.ds(row0, TJ), :] = blk_max + jnp.log(blk_sum)

    # ---- nominator: logsumexp of the diagonal (1, F) slice of each owned row.
    if TJ == B:
        x_own = x                                  # single full tile: reuse.
    else:
        # Re-derive only the owned rows' scores with a tiny MXU matmul
        # (TJ x Dp x TN) rather than dynamically slicing the big (B, TN) value.
        x_own = lax.dot_general(ctx_ref[pl.ds(row0, TJ), :], qry,
                                dimension_numbers=(((1,), (1,)), ((), ())),
                                preferred_element_type=jnp.float32)  # (TJ, TN)
    xd = jnp.where(dmask, x_own, neg_inf)          # mask BEFORE exp: no exp(inf)
    nom_max = jnp.max(xd, axis=1, keepdims=True)                 # (TJ, 1), finite
    nom_lse = nom_max + jnp.log(jnp.sum(jnp.exp(xd - nom_max), axis=1, keepdims=True))
    nom_sc[pl.ds(row0, TJ), :] = nom_lse

    # ---- finalize this grid slice: emit per-row partials for the JAX epilogue.
    @pl.when(t == nt_p - 1)
    def _finalize():
        row_out[0] = row_m[...] + jnp.log(row_s[...])            # partial row LSE
        col_out[0] = col_sc[...]                                 # -inf where not owned
        nom_out[0] = nom_sc[...]                                 # -inf where not owned


def _tpu_vmem_capacity_bytes():
    """Best-effort per-core VMEM capacity (v5e/v6e: 128 MiB, v7x: 64 MiB)."""
    try:
        info = pltpu.get_tpu_info()
        cap = getattr(info, "vmem_capacity_bytes", None)
        if cap:
            return int(cap)
    except Exception:
        pass
    return 128 * 1024 * 1024


def _choose_tile(B, F, Dp, dtype_bytes, target_cols, q_cap_bytes,
                 interm_cap_bytes=2 * 1024 * 1024):
    """Pick TJ = number of F-blocks of columns per tile.

    Constraints: TJ divides B; TJ % 8 == 0 (aligned dynamic sublane stores and
    context loads) unless TJ == B (single full tile); the streamed queries
    buffer (TN, Dp) stays under q_cap_bytes (generation-aware); the f32
    (B, TN) per-tile temporaries stay under interm_cap_bytes (bounds vreg
    spill traffic); TN <= target_cols.  Largest TJ satisfying everything wins.
    """
    cands = sorted({c for c in range(8, B + 1, 8) if B % c == 0} | {B})

    def ok(c):
        tn = c * F
        return (tn <= max(target_cols, F)
                and tn * Dp * dtype_bytes <= q_cap_bytes
                and B * tn * 4 <= interm_cap_bytes)

    good = [c for c in cands if ok(c)]
    return good[-1] if good else cands[0]


def frame_nce(contexts, queries, num_frames, *, reduction='mean',
              compute_dtype=jnp.bfloat16, target_tile_cols=512,
              num_parallel=None, query_buffers=None):
    """contexts: (B, D), queries: (B*F, D) -> scalar loss ('mean') or (B,) vector."""
    B, D = contexts.shape
    BF, D2 = queries.shape
    F = int(num_frames)
    assert D == D2 and BF == B * F, (contexts.shape, queries.shape, F)

    # bf16 streaming by default: halves HBM traffic and query VMEM footprint.
    # All score / LSE accumulation stays f32 inside the kernel.
    if compute_dtype is not None:
        contexts = contexts.astype(compute_dtype)
        queries = queries.astype(compute_dtype)

    # Zero-pad the contraction dim to a 128-lane multiple (no-op on the math).
    Dp = ((D + 127) // 128) * 128
    if Dp != D:
        contexts = jnp.pad(contexts, ((0, 0), (0, Dp - D)))
        queries = jnp.pad(queries, ((0, 0), (0, Dp - D)))

    dtype_bytes = jnp.dtype(contexts.dtype).itemsize
    vmem_cap = _tpu_vmem_capacity_bytes()
    q_cap = vmem_cap // 10                      # ~12.8 MiB (v5e/v6e) / ~6.4 MiB (v7x)
    vmem_limit = max(32 * 1024 * 1024, min(vmem_cap // 2, 64 * 1024 * 1024))

    TJ = _choose_tile(B, F, Dp, dtype_bytes, target_tile_cols, q_cap)
    TN = TJ * F
    nt = B // TJ
    assert TN % 8 == 0 or TN == B * F, (TJ, F)   # (8,128) BlockSpec rule
    assert TJ % 8 == 0 or TJ == B, TJ            # aligned dynamic sublane stores

    # v7x megacore split of the column-tile loop; harmless serial loop on 1-TC chips.
    if num_parallel is None:
        P = 2 if (nt % 2 == 0 and nt >= 2) else 1
    else:
        P = int(num_parallel)
        assert nt % P == 0, (nt, P)
    nt_p = nt // P

    q_spec_kwargs = {}
    if query_buffers is not None and int(query_buffers) != 2:
        # Deeper query pipeline when profiling shows the DMA exposed.
        q_spec_kwargs["pipeline_mode"] = pl.Buffered(int(query_buffers))

    kernel = functools.partial(frame_nce_kernel, B=B, F=F, TJ=TJ, nt_p=nt_p)
    out_row, out_col, out_nom = pl.pallas_call(
        kernel,
        out_shape=(jax.ShapeDtypeStruct((P, B, 1), jnp.float32),
                   jax.ShapeDtypeStruct((P, B, 1), jnp.float32),
                   jax.ShapeDtypeStruct((P, B, 1), jnp.float32)),
        grid_spec=pltpu.PrefetchScalarGridSpec(
            num_scalar_prefetch=0,
            grid=(P, nt_p),
            in_specs=[
                # contexts: resident (index never changes -> copied once).
                pl.BlockSpec((B, Dp), lambda p, t: (0, 0)),
                # queries: streamed, one TN-row slab per grid step.
                pl.BlockSpec((TN, Dp), lambda p, t: (p * nt_p + t, 0),
                             **q_spec_kwargs),
            ],
            out_specs=[
                pl.BlockSpec((1, B, 1), lambda p, t: (p, 0, 0)),
                pl.BlockSpec((1, B, 1), lambda p, t: (p, 0, 0)),
                pl.BlockSpec((1, B, 1), lambda p, t: (p, 0, 0)),
            ],
            scratch_shapes=[
                pltpu.VMEM((B, 1), jnp.float32),   # row_m (running row max)
                pltpu.VMEM((B, 1), jnp.float32),   # row_s (running row sum)
                pltpu.VMEM((B, 1), jnp.float32),   # col_sc (per-row column-block lse)
                pltpu.VMEM((B, 1), jnp.float32),   # nom_sc (per-row diagonal lse)
            ],
        ),
        compiler_params=pltpu.CompilerParams(
            dimension_semantics=("parallel", "arbitrary"),
            vmem_limit_bytes=vmem_limit,
        ),
    )(contexts, queries)

    # Tiny epilogue (B rows of scalars): merge the per-slice partials.
    row_lse = jax.nn.logsumexp(out_row[:, :, 0], axis=0)   # cross-slice LSE merge
    col_lse = jnp.max(out_col[:, :, 0], axis=0)            # each row owned by one slice
    nom_lse = jnp.max(out_nom[:, :, 0], axis=0)
    den = jnp.logaddexp(row_lse, col_lse)
    per_row = den - nom_lse
    if reduction:
        return jnp.mean(per_row)
    return per_row


def frame_nce_ref(contexts, queries, F):
    """Pure-JAX reference mirroring the PyTorch forward exactly (per-row)."""
    B = contexts.shape[0]
    x = (contexts @ queries.T).reshape(B, B, F)
    nom = jax.nn.logsumexp(x[jnp.arange(B), jnp.arange(B), :], axis=1)
    den = jnp.concatenate([x, jnp.transpose(x, (1, 0, 2))], axis=1).reshape(B, -1)
    den = jax.nn.logsumexp(den, axis=1)
    return den - nom


if __name__ == "__main__":
    B, F, D = 32, 16, 48   # batch=32, frames-per-query=16, hidden=48
    key = jax.random.PRNGKey(0)
    k1, k2 = jax.random.split(key)
    contexts = jax.random.normal(k1, (B, D), dtype=jnp.float32)
    queries = jax.random.normal(k2, (B * F, D), dtype=jnp.float32)

    per_row_ref = frame_nce_ref(contexts, queries, F)
    ref = jnp.mean(per_row_ref)

    # 1) f32, single-tile path (whole score matrix handled in one grid step).
    out = frame_nce(contexts, queries, F, compute_dtype=jnp.float32)
    jax.block_until_ready(out)
    assert jnp.allclose(out, ref, atol=1e-4, rtol=1e-4), (out, ref)

    # 2) f32, streaming path on a single slice: 4 column tiles -> exercises the
    #    online row-LSE accumulators and per-tile ownership logic.
    out = frame_nce(contexts, queries, F, compute_dtype=jnp.float32,
                    target_tile_cols=128, num_parallel=1)
    jax.block_until_ready(out)
    assert jnp.allclose(out, ref, atol=1e-4, rtol=1e-4), (out, ref)

    # 3) f32, streaming + 2-way parallel slices (v7x megacore path; runs as a
    #    harmless sequential loop on 1-TC chips) + per-row (reduction=None) output.
    out_rows = frame_nce(contexts, queries, F, compute_dtype=jnp.float32,
                         target_tile_cols=128, reduction=None)
    jax.block_until_ready(out_rows)
    assert out_rows.shape == (B,)
    assert jnp.allclose(out_rows, per_row_ref, atol=1e-4, rtol=1e-4)

    # 4) default bf16 streaming inputs (f32 accumulation): bf16-level tolerance.
    out = frame_nce(contexts, queries, F, target_tile_cols=128)
    jax.block_until_ready(out)
    assert jnp.allclose(out, ref, atol=1e-1, rtol=5e-2), (out, ref)

    print("KERNEL_OK")
</pallas_src>

<mosaic_0001>
module attributes {stable_mosaic.version = 11 : i64} {
  func.func @frame_nce_kernel(%arg0: i32, %arg1: i32, %arg2: memref<32x128xf32, #tpu.memory_space<vmem>>, %arg3: memref<512x128xf32, #tpu.memory_space<vmem>>, %arg4: memref<1x32x1xf32, #tpu.memory_space<vmem>>, %arg5: memref<1x32x1xf32, #tpu.memory_space<vmem>>, %arg6: memref<1x32x1xf32, #tpu.memory_space<vmem>>, %arg7: memref<32x1xf32, #tpu.memory_space<vmem>>, %arg8: memref<32x1xf32, #tpu.memory_space<vmem>>, %arg9: memref<32x1xf32, #tpu.memory_space<vmem>>, %arg10: memref<32x1xf32, #tpu.memory_space<vmem>>) attributes {dimension_semantics = [#tpu.dimension_semantics<parallel>, #tpu.dimension_semantics<arbitrary>], iteration_bounds = array<i64: 1, 1>, scalar_prefetch = 0 : i64, scratch_operands = 4 : i64, tpu.core_type = #tpu.core_type<tc>, window_params = [{pipeline_mode = #tpu.pipeline_mode<synchronous>, transform_indices = @transform_0, window_bounds = array<i64: 32, 128>}, {transform_indices = @transform_1, window_bounds = array<i64: 512, 128>}, {transform_indices = @transform_2, window_bounds = array<i64: 1, 32, 1>}, {transform_indices = @transform_3, window_bounds = array<i64: 1, 32, 1>}, {transform_indices = @transform_4, window_bounds = array<i64: 1, 32, 1>}]} {
    %c0_i32 = arith.constant 0 : i32
    %0 = arith.cmpi eq, %arg1, %c0_i32 : i32
    %1 = arith.extui %0 : i1 to i32
    %cst = arith.constant 0xFF800000 : f32
    %c0_i32_0 = arith.constant 0 : i32
    %2 = arith.cmpi ne, %1, %c0_i32_0 : i32
    scf.if %2 {
      %78 = vector.broadcast %cst : f32 to vector<32x1xf32>
      %c0_31 = arith.constant 0 : index
      %c0_32 = arith.constant 0 : index
      %79 = vector.load %arg7[%c0_31, %c0_32] : memref<32x1xf32, #tpu.memory_space<vmem>>, vector<32x1xf32>
      tpu.vector_store %arg7[%c0_31, %c0_32], %78 {strides = array<i32>} : memref<32x1xf32, #tpu.memory_space<vmem>>, vector<32x1xf32>,
      %cst_33 = arith.constant 0.000000e+00 : f32
      %80 = vector.broadcast %cst_33 : f32 to vector<32x1xf32>
      %c0_34 = arith.constant 0 : index
      %c0_35 = arith.constant 0 : index
      %81 = vector.load %arg8[%c0_34, %c0_35] : memref<32x1xf32, #tpu.memory_space<vmem>>, vector<32x1xf32>
      tpu.vector_store %arg8[%c0_34, %c0_35], %80 {strides = array<i32>} : memref<32x1xf32, #tpu.memory_space<vmem>>, vector<32x1xf32>,
      %82 = vector.broadcast %cst : f32 to vector<32x1xf32>
      %c0_36 = arith.constant 0 : index
      %c0_37 = arith.constant 0 : index
      %83 = vector.load %arg9[%c0_36, %c0_37] : memref<32x1xf32, #tpu.memory_space<vmem>>, vector<32x1xf32>
      tpu.vector_store %arg9[%c0_36, %c0_37], %82 {strides = array<i32>} : memref<32x1xf32, #tpu.memory_space<vmem>>, vector<32x1xf32>,
      %84 = vector.broadcast %cst : f32 to vector<32x1xf32>
      %c0_38 = arith.constant 0 : index
      %c0_39 = arith.constant 0 : index
      %85 = vector.load %arg10[%c0_38, %c0_39] : memref<32x1xf32, #tpu.memory_space<vmem>>, vector<32x1xf32>
      tpu.vector_store %arg10[%c0_38, %c0_39], %84 {strides = array<i32>} : memref<32x1xf32, #tpu.memory_space<vmem>>, vector<32x1xf32>,
    } else {
    }
    %c0 = arith.constant 0 : index
    %c0_1 = arith.constant 0 : index
    %3 = vector.load %arg2[%c0, %c0_1] : memref<32x128xf32, #tpu.memory_space<vmem>>, vector<32x128xf32>
    %c0_2 = arith.constant 0 : index
    %c0_3 = arith.constant 0 : index
    %4 = vector.load %arg3[%c0_2, %c0_3] : memref<512x128xf32, #tpu.memory_space<vmem>>, vector<512x128xf32>
    %cst_4 = arith.constant dense<0.000000e+00> : vector<32x512xf32>
    %5 = tpu.matmul %3, %4, %cst_4 {dimension_numbers = #tpu.dot_dimension_numbers<[1], [1], [0], [0], [0, 0, 1, 0], [], []>} : vector<32x128xf32>, vector<512x128xf32>, vector<32x512xf32> -> vector<32x512xf32>
    %c0_5 = arith.constant 0 : index
    %c0_6 = arith.constant 0 : index
    %6 = vector.load %arg7[%c0_5, %c0_6] : memref<32x1xf32, #tpu.memory_space<vmem>>, vector<32x1xf32>
    %cst_7 = arith.constant dense<0xFF800000> : vector<32xf32>
    %7 = vector.multi_reduction <maximumf>, %5, %cst_7 [1] : vector<32x512xf32> to vector<32xf32>
    %8 = vector.shape_cast %7 : vector<32xf32> to vector<32x1xf32>
    %9 = arith.maximumf %6, %8 : vector<32x1xf32>
    %10 = vector.broadcast %9 : vector<32x1xf32> to vector<32x512xf32>
    %11 = arith.subf %5, %10 : vector<32x512xf32>
    %12 = math.exp %11 : vector<32x512xf32>
    %cst_8 = arith.constant 1.000000e+00 : f32
    %13 = vector.broadcast %cst_8 : f32 to vector<512x1xf32>
    %cst_9 = arith.constant dense<0.000000e+00> : vector<32x1xf32>
    %14 = tpu.matmul %12, %13, %cst_9 {dimension_numbers = #tpu.dot_dimension_numbers<[1], [0], [0], [1], [0, 0, 1, 1], [], []>} : vector<32x512xf32>, vector<512x1xf32>, vector<32x1xf32> -> vector<32x1xf32>
    %c0_10 = arith.constant 0 : index
    %c0_11 = arith.constant 0 : index
    %15 = vector.load %arg8[%c0_10, %c0_11] : memref<32x1xf32, #tpu.memory_space<vmem>>, vector<32x1xf32>
    %16 = arith.subf %6, %9 : vector<32x1xf32>
    %17 = math.exp %16 : vector<32x1xf32>
    %18 = arith.mulf %15, %17 : vector<32x1xf32>
    %19 = arith.addf %18, %14 : vector<32x1xf32>
    %c0_12 = arith.constant 0 : index
    %c0_13 = arith.constant 0 : index
    %20 = vector.load %arg8[%c0_12, %c0_13] : memref<32x1xf32, #tpu.memory_space<vmem>>, vector<32x1xf32>
    tpu.vector_store %arg8[%c0_12, %c0_13], %19 {strides = array<i32>} : memref<32x1xf32, #tpu.memory_space<vmem>>, vector<32x1xf32>,
    %c0_14 = arith.constant 0 : index
    %c0_15 = arith.constant 0 : index
    %21 = vector.load %arg7[%c0_14, %c0_15] : memref<32x1xf32, #tpu.memory_space<vmem>>, vector<32x1xf32>
    tpu.vector_store %arg7[%c0_14, %c0_15], %9 {strides = array<i32>} : memref<32x1xf32, #tpu.memory_space<vmem>>, vector<32x1xf32>,
    %c1_i32 = arith.constant 1 : i32
    %22 = arith.muli %arg0, %c1_i32 : i32
    %23 = arith.addi %22, %arg1 : i32
    %c32_i32 = arith.constant 32 : i32
    %24 = arith.muli %23, %c32_i32 : i32
    %25 = tpu.assume_multiple %24, 8 : i32
    %cst_16 = arith.constant dense<0xFF800000> : vector<512xf32>
    %26 = vector.multi_reduction <maximumf>, %5, %cst_16 [0] : vector<32x512xf32> to vector<512xf32>
    %27 = vector.shape_cast %26 : vector<512xf32> to vector<1x512xf32>
    %28 = vector.broadcast %27 : vector<1x512xf32> to vector<32x512xf32>
    %29 = arith.subf %5, %28 : vector<32x512xf32>
    %30 = math.exp %29 : vector<32x512xf32>
    %cst_17 = arith.constant 1.000000e+00 : f32
    %31 = vector.broadcast %cst_17 : f32 to vector<1x32xf32>
    %cst_18 = arith.constant dense<0.000000e+00> : vector<1x512xf32>
    %32 = tpu.matmul %31, %30, %cst_18 {dimension_numbers = #tpu.dot_dimension_numbers<[1], [0], [0], [1], [0, 0, 1, 1], [], []>} : vector<1x32xf32>, vector<32x512xf32>, vector<1x512xf32> -> vector<1x512xf32>
    %33 = tpu.iota {dimensions = array<i32: 0>} : vector<32x512xi32>
    %34 = tpu.iota {dimensions = array<i32: 1>} : vector<32x512xi32>
    %c16_i32 = arith.constant 16 : i32
    %35 = vector.broadcast %c16_i32 : i32 to vector<32x512xi32>
    %36 = arith.muli %33, %35 : vector<32x512xi32>
    %37 = arith.cmpi sge, %34, %36 : vector<32x512xi32>
    %c1_i32_19 = arith.constant 1 : i32
    %38 = vector.broadcast %c1_i32_19 : i32 to vector<32x512xi32>
    %39 = arith.addi %33, %38 : vector<32x512xi32>
    %c16_i32_20 = arith.constant 16 : i32
    %40 = vector.broadcast %c16_i32_20 : i32 to vector<32x512xi32>
    %41 = arith.muli %39, %40 : vector<32x512xi32>
    %42 = arith.cmpi slt, %34, %41 : vector<32x512xi32>
    %43 = arith.andi %37, %42 : vector<32x512xi1>
    %44 = vector.shape_cast %27 : vector<1x512xf32> to vector<1x512xf32>
    %45 = vector.broadcast %44 : vector<1x512xf32> to vector<32x512xf32>
    %cst_21 = arith.constant 0xFF800000 : f32
    %46 = vector.broadcast %cst_21 : f32 to vector<32x512xf32>
    %47 = arith.select %43, %45, %46 : vector<32x512xi1>, vector<32x512xf32>
    %cst_22 = arith.constant dense<0xFF800000> : vector<32xf32>
    %48 = vector.multi_reduction <maximumf>, %47, %cst_22 [1] : vector<32x512xf32> to vector<32xf32>
    %49 = vector.shape_cast %48 : vector<32xf32> to vector<32x1xf32>
    %50 = vector.shape_cast %32 : vector<1x512xf32> to vector<1x512xf32>
    %51 = vector.broadcast %50 : vector<1x512xf32> to vector<32x512xf32>
    %52 = vector.broadcast %49 : vector<32x1xf32> to vector<32x512xf32>
    %53 = arith.subf %47, %52 : vector<32x512xf32>
    %54 = math.exp %53 : vector<32x512xf32>
    %55 = arith.mulf %51, %54 : vector<32x512xf32>
    %cst_23 = arith.constant dense<0.000000e+00> : vector<32xf32>
    %56 = vector.multi_reduction <add>, %55, %cst_23 [1] : vector<32x512xf32> to vector<32xf32>
    %57 = vector.shape_cast %56 : vector<32xf32> to vector<32x1xf32>
    %58 = math.log %57 : vector<32x1xf32>
    %59 = arith.addf %49, %58 : vector<32x1xf32>
    %60 = arith.index_cast %25 : i32 to index
    %c0_24 = arith.constant 0 : index
    %61 = vector.load %arg9[%60, %c0_24] : memref<32x1xf32, #tpu.memory_space<vmem>>, vector<32x1xf32>
    tpu.vector_store %arg9[%60, %c0_24], %59 {strides = array<i32>} : memref<32x1xf32, #tpu.memory_space<vmem>>, vector<32x1xf32>,
    %cst_25 = arith.constant 0xFF800000 : f32
    %62 = vector.broadcast %cst_25 : f32 to vector<32x512xf32>
    %63 = arith.select %43, %5, %62 : vector<32x512xi1>, vector<32x512xf32>
    %cst_26 = arith.constant dense<0xFF800000> : vector<32xf32>
    %64 = vector.multi_reduction <maximumf>, %63, %cst_26 [1] : vector<32x512xf32> to vector<32xf32>
    %65 = vector.shape_cast %64 : vector<32xf32> to vector<32x1xf32>
    %66 = vector.broadcast %65 : vector<32x1xf32> to vector<32x512xf32>
    %67 = arith.subf %63, %66 : vector<32x512xf32>
    %68 = math.exp %67 : vector<32x512xf32>
    %cst_27 = arith.constant dense<0.000000e+00> : vector<32xf32>
    %69 = vector.multi_reduction <add>, %68, %cst_27 [1] : vector<32x512xf32> to vector<32xf32>
    %70 = vector.shape_cast %69 : vector<32xf32> to vector<32x1xf32>
    %71 = math.log %70 : vector<32x1xf32>
    %72 = arith.addf %65, %71 : vector<32x1xf32>
    %73 = arith.index_cast %25 : i32 to index
    %c0_28 = arith.constant 0 : index
    %74 = vector.load %arg10[%73, %c0_28] : memref<32x1xf32, #tpu.memory_space<vmem>>, vector<32x1xf32>
    tpu.vector_store %arg10[%73, %c0_28], %72 {strides = array<i32>} : memref<32x1xf32, #tpu.memory_space<vmem>>, vector<32x1xf32>,
    %c0_i32_29 = arith.constant 0 : i32
    %75 = arith.cmpi eq, %arg1, %c0_i32_29 : i32
    %76 = arith.extui %75 : i1 to i32
    %c0_i32_30 = arith.constant 0 : i32
    %77 = arith.cmpi ne, %76, %c0_i32_30 : i32
    scf.if %77 {
      %c0_31 = arith.constant 0 : index
      %c0_32 = arith.constant 0 : index
      %78 = vector.load %arg7[%c0_31, %c0_32] : memref<32x1xf32, #tpu.memory_space<vmem>>, vector<32x1xf32>
      %c0_33 = arith.constant 0 : index
      %c0_34 = arith.constant 0 : index
      %79 = vector.load %arg8[%c0_33, %c0_34] : memref<32x1xf32, #tpu.memory_space<vmem>>, vector<32x1xf32>
      %80 = math.log %79 : vector<32x1xf32>
      %81 = arith.addf %78, %80 : vector<32x1xf32>
      %c0_35 = arith.constant 0 : index
      %c0_36 = arith.constant 0 : index
      %c0_37 = arith.constant 0 : index
      %82 = vector.load %arg4[%c0_35, %c0_36, %c0_37] : memref<1x32x1xf32, #tpu.memory_space<vmem>>, vector<1x32x1xf32>
      %83 = vector.shape_cast %82 : vector<1x32x1xf32> to vector<32x1xf32>
      %84 = vector.shape_cast %81 : vector<32x1xf32> to vector<1x32x1xf32>
      tpu.vector_store %arg4[%c0_35, %c0_36, %c0_37], %84 {strides = array<i32>} : memref<1x32x1xf32, #tpu.memory_space<vmem>>, vector<1x32x1xf32>,
      %c0_38 = arith.constant 0 : index
      %c0_39 = arith.constant 0 : index
      %85 = vector.load %arg9[%c0_38, %c0_39] : memref<32x1xf32, #tpu.memory_space<vmem>>, vector<32x1xf32>
      %c0_40 = arith.constant 0 : index
      %c0_41 = arith.constant 0 : index
      %c0_42 = arith.constant 0 : index
      %86 = vector.load %arg5[%c0_40, %c0_41, %c0_42] : memref<1x32x1xf32, #tpu.memory_space<vmem>>, vector<1x32x1xf32>
      %87 = vector.shape_cast %86 : vector<1x32x1xf32> to vector<32x1xf32>
      %88 = vector.shape_cast %85 : vector<32x1xf32> to vector<1x32x1xf32>
      tpu.vector_store %arg5[%c0_40, %c0_41, %c0_42], %88 {strides = array<i32>} : memref<1x32x1xf32, #tpu.memory_space<vmem>>, vector<1x32x1xf32>,
      %c0_43 = arith.constant 0 : index
      %c0_44 = arith.constant 0 : index
      %89 = vector.load %arg10[%c0_43, %c0_44] : memref<32x1xf32, #tpu.memory_space<vmem>>, vector<32x1xf32>
      %c0_45 = arith.constant 0 : index
      %c0_46 = arith.constant 0 : index
      %c0_47 = arith.constant 0 : index
      %90 = vector.load %arg6[%c0_45, %c0_46, %c0_47] : memref<1x32x1xf32, #tpu.memory_space<vmem>>, vector<1x32x1xf32>
      %91 = vector.shape_cast %90 : vector<1x32x1xf32> to vector<32x1xf32>
      %92 = vector.shape_cast %89 : vector<32x1xf32> to vector<1x32x1xf32>
      tpu.vector_store %arg6[%c0_45, %c0_46, %c0_47], %92 {strides = array<i32>} : memref<1x32x1xf32, #tpu.memory_space<vmem>>, vector<1x32x1xf32>,
    } else {
    }
    return
  }
  func.func @transform_0(%arg0: i32, %arg1: i32) -> (i32, i32) {
    %c0_i32 = arith.constant 0 : i32
    %c0_i32_0 = arith.constant 0 : i32
    %c0_i32_1 = arith.constant 0 : i32
    return %c0_i32, %c0_i32_0 : i32, i32
  }
  func.func @transform_1(%arg0: i32, %arg1: i32) -> (i32, i32) {
    %c1_i32 = arith.constant 1 : i32
    %0 = arith.muli %arg0, %c1_i32 : i32
    %1 = arith.addi %0, %arg1 : i32
    %c0_i32 = arith.constant 0 : i32
    %c0_i32_0 = arith.constant 0 : i32
    return %1, %c0_i32 : i32, i32
  }
  func.func @transform_2(%arg0: i32, %arg1: i32) -> (i32, i32, i32) {
    %c0_i32 = arith.constant 0 : i32
    %c0_i32_0 = arith.constant 0 : i32
    %c0_i32_1 = arith.constant 0 : i32
    return %arg0, %c0_i32, %c0_i32_0 : i32, i32, i32
  }
  func.func @transform_3(%arg0: i32, %arg1: i32) -> (i32, i32, i32) {
    %c0_i32 = arith.constant 0 : i32
    %c0_i32_0 = arith.constant 0 : i32
    %c0_i32_1 = arith.constant 0 : i32
    return %arg0, %c0_i32, %c0_i32_0 : i32, i32, i32
  }
  func.func @transform_4(%arg0: i32, %arg1: i32) -> (i32, i32, i32) {
    %c0_i32 = arith.constant 0 : i32
    %c0_i32_0 = arith.constant 0 : i32
    %c0_i32_1 = arith.constant 0 : i32
    return %arg0, %c0_i32, %c0_i32_0 : i32, i32, i32
  }
}

</mosaic_0001>

<bundles_post_ra>
// kernel: tpu_custom_call.1
= control target key start
LH: loop header
LB: loop body
LE: loop exit
PB: predicated region body
PF: predicated region fallthrough
CT: control target
= control target key end

     0   :  { %10 = vsyncpa [#allocation7], 0  ;;  %s2676_s0 = inlined_call_operand.hbm [shape: f32[32,128], index: 0, kind: input, shape index: {}]   ;;  %s2677_s1 = inlined_call_operand.hbm [shape: f32[512,128], index: 1, kind: input, shape index: {}]   ;;  %s2678_s2 = inlined_call_operand.hbm [shape: f32[1,32,1], index: 2, kind: output, shape index: {0}]   ;;  %s2679_s3 = inlined_call_operand.hbm [shape: f32[1,32,1], index: 3, kind: output, shape index: {1}]   ;;  %s2680_s4 = inlined_call_operand.hbm [shape: f32[1,32,1], index: 4, kind: output, shape index: {2}]  }
   0x1   :  { %11 = vsyncpa [#allocation10], 0 }
   0x2   :  { %12 = vsyncpa [#allocation8], 0 }
   0x3   :  { %13 = vsyncpa [#allocation13], 0  ;;  %s1858_s15 = smov [#allocation6]   ;;  %s1740_s19 = scalar_lea.hbm %s2676_s0, 512 }
   0x4   :  { %s19_s16 = sshll.u32 %s1858_s15, 4  ;;  %p1741_p0 = scmp.ne.s32.totalorder %s2676_s0, %s1740_s19  ;;  %s20_s16 = int_to_ptr.vmem [resolvable:$true] %s19_s16 }
   0x5   :  { %p1744_p1 = scmp.lt.u32.totalorder %s1740_s19, %s2676_s0 }
   0x7   :  { %p1746_p2 = pnand %p1744_p1, %p1741_p0 }
   0x9   :  { %1749 = shalt.err (!%p1746_p2)
}
   0xa   :  { %s1750_s24 = scalar_lea.vmem %s20_s16, 512  ;;  %p1755_p4 = scmp.lt.s32.totalorder %s20_s16, %s20_s16 }
   0xb   :  { %p1751_p3 = scmp.ne.s32.totalorder %s20_s16, %s1750_s24  ;;  %p1756_p5 = scmp.lt.s32.totalorder %s1750_s24, %s1750_s24 }
   0xd   :  { %p1757_p6 = por %p1756_p5, %p1755_p4 }
   0xf   :  { %p1758_p7 = pnand %p1757_p6, %p1751_p3 }
  0x11   :  { %1761 = shalt.err (!%p1758_p7)
}
  0x12   :  { %s1859_s25 = smov 128   ;;  %s1860_s26 = smov 8  }
  0x13   :  { %25 = dma.hbm_to_vmem [thread:$0]  %s2676_s0, 512, %s20_s16, [#allocation7], %s1859_s25, %s1859_s25, %s1860_s26  }
  0x14   :  { %s1861_s29 = smov [#allocation9]   ;;  %s1762_s7 = scalar_lea.hbm %s2677_s1, 8192 }
  0x15   :  { %s35_s30 = sshll.u32 %s1861_s29, 4  ;;  %p1763_p8 = scmp.ne.s32.totalorder %s2677_s1, %s1762_s7  ;;  %s36_s30 = int_to_ptr.vmem [resolvable:$true] %s35_s30 }
  0x16   :  { %p1766_p9 = scmp.lt.u32.totalorder %s1762_s7, %s2677_s1 }
  0x18   :  { %p1768_p10 = pnand %p1766_p9, %p1763_p8 }
  0x1a   :  { %1771 = shalt.err (!%p1768_p10)
}
  0x1b   :  { %s1772_s12 = scalar_lea.vmem %s36_s30, 8192  ;;  %p1777_p12 = scmp.lt.s32.totalorder %s36_s30, %s36_s30 }
  0x1c   :  { %p1773_p11 = scmp.ne.s32.totalorder %s36_s30, %s1772_s12  ;;  %p1778_p13 = scmp.lt.s32.totalorder %s1772_s12, %s1772_s12 }
  0x1e   :  { %p1779_p0 = por %p1778_p13, %p1777_p12 }
  0x20   :  { %p1780_p1 = pnand %p1779_p0, %p1773_p11 }
  0x22   :  { %1783 = shalt.err (!%p1780_p1)
}
  0x23   :  { %41 = dma.hbm_to_vmem [thread:$0]  %s2677_s1, 8192, %s36_s30, [#allocation10], %s1859_s25, %s1859_s25, %s1860_s26  }
  0x24   :  { %1850 = dma.done.wait [#allocation7], 512  }
  0x25   :  { %1851 = vsyncadd [#allocation7], 4294966784 }
  0x26   :  { %1852 = dma.done.wait [#allocation10], 8192  }
  0x27   :  { %1853 = vsyncadd [#allocation10], 4294959104  ;;  %v91_v0 = vld [vmem:[#allocation9 + $0x80] sm:$0xff]  ;;  %v92_v1 = vld [vmem:[#allocation9 + $0x88] sm:$0xff]  ;;  %vm2692_vm0 = vcmask 7168   ;;  %s1867_s1 = smov [#allocation11]  }
  0x28   :  { %v123_v2 = vld [vmem:[#allocation9 + $0x180] sm:$0xff]  ;;  %v1454_v3 = vpack.c.bf16 %v92_v1, %v91_v0  ;;  %v124_v4 = vld [vmem:[#allocation9 + $0x188] sm:$0xff]  ;;  %v93_v11 = vld [vmem:[#allocation9 + $0x90] sm:$0xff]  ;;  %s1240_s14 = sshll.u32 %s1867_s1, 4  ;;  %s1241_s14 = int_to_ptr.vmem [resolvable:$true] %s1240_s14 }
  0x29   :  { %v75_v5 = vld [vmem:[#allocation9] sm:$0xff]  ;;  %v76_v6 = vld [vmem:[#allocation9 + $0x8] sm:$0xff]  ;;  %v1486_v7 = vpack.c.bf16 %v124_v4, %v123_v2  ;;  %v94_v13 = vld [vmem:[#allocation9 + $0x98] sm:$0xff]  ;;  %s1784_s15 = scalar_lea.vmem %s1241_s14, 512  ;;  %p1789_p3 = scmp.lt.s32.totalorder %s1241_s14, %s1241_s14 }
  0x2a   :  { %v1456_v8 = vpack.c.bf16 %v76_v6, %v75_v5  ;;  %v107_v9 = vld [vmem:[#allocation9 + $0x100] sm:$0xff]  ;;  %v108_v10 = vld [vmem:[#allocation9 + $0x108] sm:$0xff]  ;;  %1455 = vmatprep.subr.bf16.mxu0 %v1454_v3  ;;  %v125_v14 = vld [vmem:[#allocation9 + $0x190] sm:$0xff]  ;;  %v1458_v16 = vpack.c.bf16 %v94_v13, %v93_v11  ;;  %p1785_p2 = scmp.ne.s32.totalorder %s1241_s14, %s1784_s15  ;;  %p1790_p4 = scmp.lt.s32.totalorder %s1784_s15, %s1784_s15 }
  0x2b   :  { %v1488_v12 = vpack.c.bf16 %v108_v10, %v107_v9  ;;  %v126_v15 = vld [vmem:[#allocation9 + $0x198] sm:$0xff]  ;;  %1487 = vmatprep.subr.bf16.mxu1 %v1486_v7  ;;  %v77_v18 = vld [vmem:[#allocation9 + $0x10] sm:$0xff]  ;;  %v95_v22 = vld [vmem:[#allocation9 + $0xa0] sm:$0xff] }
  0x2c   :  { %1457 = vmatpush3.bf16.xpose.msra.mxu0 %v1456_v8  ;;  %v1490_v17 = vpack.c.bf16 %v126_v15, %v125_v14  ;;  %v78_v19 = vld [vmem:[#allocation9 + $0x18] sm:$0xff]  ;;  %v109_v20 = vld [vmem:[#allocation9 + $0x110] sm:$0xff]  ;;  %v96_v23 = vld [vmem:[#allocation9 + $0xa8] sm:$0xff]  ;;  %p1791_p5 = por %p1790_p4, %p1789_p3 }
  0x2d   :  { %1489 = vmatpush3.bf16.xpose.msra.mxu1 %v1488_v12  ;;  %1459 = vmatprep.subr.bf16.mxu0 %v1458_v16  ;;  %v110_v21 = vld [vmem:[#allocation9 + $0x118] sm:$0xff]  ;;  %v127_v24 = vld [vmem:[#allocation9 + $0x1a0] sm:$0xff]  ;;  %v128_v25 = vld [vmem:[#allocation9 + $0x1a8] sm:$0xff]  ;;  %v1460_v26 = vpack.c.bf16 %v78_v19, %v77_v18  ;;  %v1462_v28 = vpack.c.bf16 %v96_v23, %v95_v22 }
  0x2e   :  { %1491 = vmatprep.subr.bf16.mxu1 %v1490_v17  ;;  %v1492_v27 = vpack.c.bf16 %v110_v21, %v109_v20  ;;  %v1494_v29 = vpack.c.bf16 %v128_v25, %v127_v24  ;;  %v79_v30 = vld [vmem:[#allocation9 + $0x20] sm:$0xff]  ;;  %v80_v31 = vld [vmem:[#allocation9 + $0x28] sm:$0xff]  ;;  %v97_v34 = vld [vmem:[#allocation9 + $0xb0] sm:$0xff]  ;;  %p1792_p6 = pnand %p1791_p5, %p1785_p2 }
  0x2f   :  { %v111_v32 = vld [vmem:[#allocation9 + $0x120] sm:$0xff]  ;;  %v112_v33 = vld [vmem:[#allocation9 + $0x128] sm:$0xff]  ;;  %v98_v35 = vld [vmem:[#allocation9 + $0xb8] sm:$0xff]  ;;  %v1464_v38 = vpack.c.bf16 %v80_v31, %v79_v30 }
  0x30   :  { %v129_v36 = vld [vmem:[#allocation9 + $0x1b0] sm:$0xff]  ;;  %v130_v37 = vld [vmem:[#allocation9 + $0x1b8] sm:$0xff]  ;;  %v1496_v39 = vpack.c.bf16 %v112_v33, %v111_v32  ;;  %v1466_v40 = vpack.c.bf16 %v98_v35, %v97_v34  ;;  %v1925_v45 = vld [vmem:[#allocation6] sm:$0xff] }
  0x31   :  { %v1498_v41 = vpack.c.bf16 %v130_v37, %v129_v36  ;;  %v81_v42 = vld [vmem:[#allocation9 + $0x30] sm:$0xff]  ;;  %v82_v43 = vld [vmem:[#allocation9 + $0x38] sm:$0xff]  ;;  %v99_v47 = vld [vmem:[#allocation9 + $0xc0] sm:$0xff]  ;;  %1318 = vmatprep.mubr.f32.mxu0 %v1925_v45  ;;  %1358 = vmatprep.mubr.f32.mxu1 %v1925_v45  ;;  %v1862_v36 = vmov 1.0|1.0   ;;  %v1863_v37 = vmov -inf  }
  0x32   :  { %v113_v44 = vld [vmem:[#allocation9 + $0x130] sm:$0xff]  ;;  %v114_v46 = vld [vmem:[#allocation9 + $0x138] sm:$0xff]  ;;  %v100_v48 = vld [vmem:[#allocation9 + $0xc8] sm:$0xff]  ;;  %v1468_v51 = vpack.c.bf16 %v82_v43, %v81_v42  ;;  %55 = vst.msk [vmem:[#allocation2] sm:$0xff] %vm2692_vm0, %v1863_v37 }
  0x33   :  { %v131_v49 = vld [vmem:[#allocation9 + $0x1c0] sm:$0xff]  ;;  %v132_v50 = vld [vmem:[#allocation9 + $0x1c8] sm:$0xff]  ;;  %v1500_v52 = vpack.c.bf16 %v114_v46, %v113_v44  ;;  %v1470_v53 = vpack.c.bf16 %v100_v48, %v99_v47  ;;  %v101_v59 = vld [vmem:[#allocation9 + $0xd0] sm:$0xff]  ;;  %56 = vst.msk [vmem:[#allocation2 + $0x8] sm:$0xff] %vm2692_vm0, %v1863_v37 }
  0x34   :  { %1461 = vmatpush3.bf16.xpose.msra.mxu0 %v1460_v26  ;;  %v1502_v54 = vpack.c.bf16 %v132_v50, %v131_v49  ;;  %v83_v55 = vld [vmem:[#allocation9 + $0x40] sm:$0xff]  ;;  %v84_v56 = vld [vmem:[#allocation9 + $0x48] sm:$0xff]  ;;  %v102_v60 = vld [vmem:[#allocation9 + $0xd8] sm:$0xff]  ;;  %57 = vst.msk [vmem:[#allocation2 + $0x10] sm:$0xff] %vm2692_vm0, %v1863_v37 }
  0x35   :  { %1493 = vmatpush3.bf16.xpose.msra.mxu1 %v1492_v27  ;;  %1463 = vmatprep.subr.bf16.mxu0 %v1462_v28  ;;  %v115_v57 = vld [vmem:[#allocation9 + $0x140] sm:$0xff]  ;;  %v116_v58 = vld [vmem:[#allocation9 + $0x148] sm:$0xff]  ;;  %v133_v61 = vld [vmem:[#allocation9 + $0x1d0] sm:$0xff]  ;;  %v1472_v63 = vpack.c.bf16 %v84_v56, %v83_v55  ;;  %v1474_v1 = vpack.c.bf16 %v102_v60, %v101_v59  ;;  %58 = vst.msk [vmem:[#allocation2 + $0x18] sm:$0xff] %vm2692_vm0, %v1863_v37 }
  0x36   :  { %1495 = vmatprep.subr.bf16.mxu1 %v1494_v29  ;;  %v134_v62 = vld [vmem:[#allocation9 + $0x1d8] sm:$0xff]  ;;  %v1504_v0 = vpack.c.bf16 %v116_v58, %v115_v57  ;;  %v85_v3 = vld [vmem:[#allocation9 + $0x50] sm:$0xff]  ;;  %v103_v7 = vld [vmem:[#allocation9 + $0xe0] sm:$0xff]  ;;  %63 = vst.msk [vmem:[#allocation4] sm:$0xff] %vm2692_vm0, %v1863_v37 }
  0x37   :  { %v1506_v2 = vpack.c.bf16 %v134_v62, %v133_v61  ;;  %v86_v4 = vld [vmem:[#allocation9 + $0x58] sm:$0xff]  ;;  %v117_v5 = vld [vmem:[#allocation9 + $0x150] sm:$0xff]  ;;  %v104_v8 = vld [vmem:[#allocation9 + $0xe8] sm:$0xff]  ;;  %64 = vst.msk [vmem:[#allocation4 + $0x8] sm:$0xff] %vm2692_vm0, %v1863_v37 }
  0x38   :  { %v118_v6 = vld [vmem:[#allocation9 + $0x158] sm:$0xff]  ;;  %v135_v9 = vld [vmem:[#allocation9 + $0x1e0] sm:$0xff]  ;;  %v136_v10 = vld [vmem:[#allocation9 + $0x1e8] sm:$0xff]  ;;  %v1476_v11 = vpack.c.bf16 %v86_v4, %v85_v3  ;;  %v1478_v13 = vpack.c.bf16 %v104_v8, %v103_v7  ;;  %65 = vst.msk [vmem:[#allocation4 + $0x10] sm:$0xff] %vm2692_vm0, %v1863_v37 }
  0x39   :  { %v1508_v12 = vpack.c.bf16 %v118_v6, %v117_v5  ;;  %v1510_v14 = vpack.c.bf16 %v136_v10, %v135_v9  ;;  %v87_v15 = vld [vmem:[#allocation9 + $0x60] sm:$0xff]  ;;  %v88_v16 = vld [vmem:[#allocation9 + $0x68] sm:$0xff]  ;;  %v105_v19 = vld [vmem:[#allocation9 + $0xf0] sm:$0xff]  ;;  %66 = vst.msk [vmem:[#allocation4 + $0x18] sm:$0xff] %vm2692_vm0, %v1863_v37 }
  0x3a   :  { %v119_v17 = vld [vmem:[#allocation9 + $0x160] sm:$0xff]  ;;  %v120_v18 = vld [vmem:[#allocation9 + $0x168] sm:$0xff]  ;;  %v106_v20 = vld [vmem:[#allocation9 + $0xf8] sm:$0xff]  ;;  %v1480_v23 = vpack.c.bf16 %v88_v16, %v87_v15  ;;  %67 = vst.msk [vmem:[#allocation5] sm:$0xff] %vm2692_vm0, %v1863_v37 }
  0x3b   :  { %v137_v21 = vld [vmem:[#allocation9 + $0x1f0] sm:$0xff]  ;;  %v138_v22 = vld [vmem:[#allocation9 + $0x1f8] sm:$0xff]  ;;  %v1512_v24 = vpack.c.bf16 %v120_v18, %v119_v17  ;;  %v1482_v25 = vpack.c.bf16 %v106_v20, %v105_v19  ;;  %v72_v33 = vld [vmem:[#allocation6 + $0x8] sm:$0xff]  ;;  %68 = vst.msk [vmem:[#allocation5 + $0x8] sm:$0xff] %vm2692_vm0, %v1863_v37 }
  0x3c   :  { %1465 = vmatpush3.bf16.xpose.msra.mxu0 %v1464_v38  ;;  %v1514_v26 = vpack.c.bf16 %v138_v22, %v137_v21  ;;  %v89_v27 = vld [vmem:[#allocation9 + $0x70] sm:$0xff]  ;;  %v90_v28 = vld [vmem:[#allocation9 + $0x78] sm:$0xff]  ;;  %69 = vst.msk [vmem:[#allocation5 + $0x10] sm:$0xff] %vm2692_vm0, %v1863_v37  ;;  %70 = vst.msk [vmem:[#allocation5 + $0x18] sm:$0xff] %vm2692_vm0, %v1863_v37 }
  0x3d   :  { %1497 = vmatpush3.bf16.xpose.msra.mxu1 %v1496_v39  ;;  %1467 = vmatprep.subr.bf16.mxu0 %v1466_v40  ;;  %v121_v29 = vld [vmem:[#allocation9 + $0x170] sm:$0xff]  ;;  %v122_v30 = vld [vmem:[#allocation9 + $0x178] sm:$0xff]  ;;  %v1484_v31 = vpack.c.bf16 %v90_v28, %v89_v27 }
  0x3e   :  { %1499 = vmatprep.subr.bf16.mxu1 %v1498_v41  ;;  %v1516_v32 = vpack.c.bf16 %v122_v30, %v121_v29  ;;  %v73_v34 = vld [vmem:[#allocation6 + $0x10] sm:$0xff]  ;;  %v74_v35 = vld [vmem:[#allocation6 + $0x18] sm:$0xff] }
  0x44   :  { %1469 = vmatpush3.bf16.xpose.msra.mxu0 %v1468_v51 }
  0x45   :  { %1501 = vmatpush3.bf16.xpose.msra.mxu1 %v1500_v52  ;;  %1471 = vmatprep.subr.bf16.mxu0 %v1470_v53 }
  0x46   :  { %1503 = vmatprep.subr.bf16.mxu1 %v1502_v54 }
  0x4c   :  { %1473 = vmatpush3.bf16.xpose.msra.mxu0 %v1472_v63 }
  0x4d   :  { %1505 = vmatpush3.bf16.xpose.msra.mxu1 %v1504_v0  ;;  %1475 = vmatprep.subr.bf16.mxu0 %v1474_v1 }
  0x4e   :  { %1507 = vmatprep.subr.bf16.mxu1 %v1506_v2 }
  0x54   :  { %1477 = vmatpush3.bf16.xpose.msra.mxu0 %v1476_v11 }
  0x55   :  { %1509 = vmatpush3.bf16.xpose.msra.mxu1 %v1508_v12  ;;  %1479 = vmatprep.subr.bf16.mxu0 %v1478_v13 }
  0x56   :  { %1511 = vmatprep.subr.bf16.mxu1 %v1510_v14 }
  0x5c   :  { %1481 = vmatpush3.bf16.xpose.msra.mxu0 %v1480_v23 }
  0x5d   :  { %1513 = vmatpush3.bf16.xpose.msra.mxu1 %v1512_v24  ;;  %1483 = vmatprep.subr.bf16.mxu0 %v1482_v25 }
  0x5e   :  { %1515 = vmatprep.subr.bf16.mxu1 %v1514_v26 }
  0x64   :  { %1485 = vmatpush3.bf16.xpose.msra.mxu0 %v1484_v31 }
  0x65   :  { %1517 = vmatpush3.bf16.xpose.msra.mxu1 %v1516_v32  ;;  %1518 = vmatprep.subr.bf16.mxu0 %v1862_v36 }
  0x66   :  { %1534 = vmatprep.subr.bf16.mxu1 %v1862_v36 }
  0x6b   :  { %1319 = vmatmul.mubr.f32.vlgmr.msra.gmra.mrb[0].mxu0 %v1925_v45 }
  0x6c   :  { %1359 = vmatmul.mubr.f32.vlgmr.msra.gmra.mrb[0].mxu1 %v1925_v45  ;;  %1320 = vmatprep.mubr.f32.mxu0 %v72_v33 }
  0x6d   :  { %1360 = vmatprep.mubr.f32.mxu1 %v72_v33  ;;  %1519 = vmatpush3.bf16.msra.mxu0 %v1862_v36 }
  0x6e   :  { %1535 = vmatpush3.bf16.msra.mxu1 %v1862_v36  ;;  %1520 = vmatprep.subr.bf16.mxu0 %v1862_v36 }
  0x6f   :  { %1321 = vmatmul.mubr.f32.gmra.mrb[2].mxu0 %v72_v33  ;;  %1536 = vmatprep.subr.bf16.mxu1 %v1862_v36 }
  0x70   :  { %1361 = vmatmul.mubr.f32.gmra.mrb[2].mxu1 %v72_v33  ;;  %1322 = vmatprep.mubr.f32.mxu0 %v73_v34 }
  0x71   :  { %1362 = vmatprep.mubr.f32.mxu1 %v73_v34  ;;  %1521 = vmatpush3.bf16.msra.mxu0 %v1862_v36 }
  0x72   :  { %1537 = vmatpush3.bf16.msra.mxu1 %v1862_v36  ;;  %1522 = vmatprep.subr.bf16.mxu0 %v1862_v36 }
  0x73   :  { %1323 = vmatmul.mubr.f32.gmra.mrb[4].mxu0 %v73_v34  ;;  %1538 = vmatprep.subr.bf16.mxu1 %v1862_v36 }
  0x74   :  { %1363 = vmatmul.mubr.f32.gmra.mrb[4].mxu1 %v73_v34  ;;  %1324 = vmatprep.mubr.f32.mxu0 %v74_v35 }
  0x75   :  { %1364 = vmatprep.mubr.f32.mxu1 %v74_v35  ;;  %1523 = vmatpush3.bf16.msra.mxu0 %v1862_v36 }
  0x76   :  { %1539 = vmatpush3.bf16.msra.mxu1 %v1862_v36  ;;  %1524 = vmatprep.subr.bf16.mxu0 %v1862_v36 }
  0x77   :  { %1325 = vmatmul.mubr.f32.gmra.mrb[6].mxu0 %v74_v35  ;;  %1540 = vmatprep.subr.bf16.mxu1 %v1862_v36 }
  0x78   :  { %1365 = vmatmul.mubr.f32.gmra.mrb[6].mxu1 %v74_v35 }
  0x79   :  { %1525 = vmatpush3.bf16.msra.mxu0 %v1862_v36 }
  0x7a   :  { %1541 = vmatpush3.bf16.msra.mxu1 %v1862_v36  ;;  %1526 = vmatprep.subr.bf16.mxu0 %v1862_v36 }
  0x7b   :  { %1542 = vmatprep.subr.bf16.mxu1 %v1862_v36 }
  0x7d   :  { %1527 = vmatpush3.bf16.msra.mxu0 %v1862_v36 }
  0x7e   :  { %1543 = vmatpush3.bf16.msra.mxu1 %v1862_v36  ;;  %1528 = vmatprep.subr.bf16.mxu0 %v1862_v36 }
  0x7f   :  { %1544 = vmatprep.subr.bf16.mxu1 %v1862_v36 }
  0x81   :  { %1529 = vmatpush3.bf16.msra.mxu0 %v1862_v36 }
  0x82   :  { %1545 = vmatpush3.bf16.msra.mxu1 %v1862_v36  ;;  %1530 = vmatprep.subr.bf16.mxu0 %v1862_v36 }
  0x83   :  { %1546 = vmatprep.subr.bf16.mxu1 %v1862_v36 }
  0x85   :  { %1531 = vmatpush3.bf16.msra.mxu0 %v1862_v36 }
  0x86   :  { %1547 = vmatpush3.bf16.msra.mxu1 %v1862_v36  ;;  %1532 = vmatprep.subr.bf16.mxu0 %v1862_v36 }
  0x87   :  { %1548 = vmatprep.subr.bf16.mxu1 %v1862_v36 }
  0x89   :  { %1533 = vmatpush3.bf16.msra.mxu0 %v1862_v36 }
  0x8a   :  { %1549 = vmatpush3.bf16.msra.mxu1 %v1862_v36 }
 0x13e   :  { %v1943_v38 = vpop.f32.mrb[0].mxu0 }
 0x13f   :  { %v1945_v39 = vpop.f32.mrb[1].mxu0  ;;  %v1947_v40 = vpop.f32.mrb[0].mxu1 }
 0x140   :  { %v1949_v41 = vpop.f32.mrb[1].mxu1  ;;  %v321_v42 = vmax.f32 %v1943_v38, %v1945_v39 }
 0x142   :  { %v1953_v43 = vpop.f32.mrb[2].mxu0  ;;  %v322_v44 = vmax.f32 %v321_v42, %v1947_v40 }
 0x143   :  { %v618_v45 = vmax.f32 %v1943_v38, %v1953_v43  ;;  %v1958_v46 = vpop.f32.mrb[2].mxu1  ;;  %v1960_v47 = vpop.f32.mrb[3].mxu0 }
 0x144   :  { %v636_v48 = vmax.f32 %v1947_v40, %v1958_v46  ;;  %v627_v49 = vmax.f32 %v1945_v39, %v1960_v47  ;;  %v1966_v50 = vpop.f32.mrb[3].mxu1  ;;  %v323_v51 = vmax.f32 %v322_v44, %v1949_v41  ;;  %v326_v52 = vmax.f32 %v1953_v43, %v1960_v47 }
 0x145   :  { %v645_v53 = vmax.f32 %v1949_v41, %v1966_v50 }
 0x146   :  { %324 = vmax.xlane.f32.xlu0 %v323_v51  ;;  %v1973_v54 = vpop.f32.mrb[4].mxu0  ;;  %v327_v55 = vmax.f32 %v326_v52, %v1958_v46 }
 0x147   :  { %v1976_v56 = vpop.f32.mrb[4].mxu1  ;;  %v619_v57 = vmax.f32 %v618_v45, %v1973_v54  ;;  %v1979_v58 = vpop.f32.mrb[5].mxu0 }
 0x148   :  { %v637_v59 = vmax.f32 %v636_v48, %v1976_v56  ;;  %v628_v60 = vmax.f32 %v627_v49, %v1979_v58  ;;  %v1983_v61 = vpop.f32.mrb[5].mxu1  ;;  %v328_v62 = vmax.f32 %v327_v55, %v1966_v50  ;;  %v331_v63 = vmax.f32 %v1973_v54, %v1979_v58 }
 0x149   :  { %v646_v0 = vmax.f32 %v645_v53, %v1983_v61 }
 0x14a   :  { %329 = vmax.xlane.f32.xlu0 %v328_v62  ;;  %v1989_v1 = vpop.f32.mrb[6].mxu0  ;;  %v332_v2 = vmax.f32 %v331_v63, %v1976_v56  ;;  %v1864_v63 = vmov 0  }
 0x14b   :  { %v1992_v3 = vpop.f32.mrb[6].mxu1  ;;  %v620_v4 = vmax.f32 %v619_v57, %v1989_v1  ;;  %v1995_v5 = vpop.f32.mrb[7].mxu0  ;;  %1578 = vset.pattern.permute.xlu0 %v1864_v63  ;;  %1579 = vset.pattern.permute.xlu1 %v1864_v63 }
 0x14c   :  { %v638_v6 = vmax.f32 %v637_v59, %v1992_v3  ;;  %v629_v7 = vmax.f32 %v628_v60, %v1995_v5  ;;  %v1999_v8 = vpop.f32.mrb[7].mxu1  ;;  %v333_v9 = vmax.f32 %v332_v2, %v1983_v61  ;;  %v336_v10 = vmax.f32 %v1989_v1, %v1995_v5 }
 0x14d   :  { %v621_v11 = vrot.slane %v620_v4, 4  ;;  %v647_v12 = vmax.f32 %v646_v0, %v1999_v8 }
 0x14e   :  { %v639_v13 = vrot.slane %v638_v6, 4  ;;  %v630_v14 = vrot.slane %v629_v7, 4  ;;  %334 = vmax.xlane.f32.xlu1 %v333_v9  ;;  %v337_v15 = vmax.f32 %v336_v10, %v1992_v3 }
 0x14f   :  { %v622_v16 = vmax.f32 %v620_v4, %v621_v11  ;;  %v648_v17 = vrot.slane %v647_v12, 4 }
 0x150   :  { %v640_v18 = vmax.f32 %v638_v6, %v639_v13  ;;  %v631_v19 = vmax.f32 %v629_v7, %v630_v14  ;;  %v338_v20 = vmax.f32 %v337_v15, %v1999_v8 }
 0x151   :  { %v623_v21 = vrot.slane %v622_v16, 2  ;;  %v649_v22 = vmax.f32 %v647_v12, %v648_v17 }
 0x152   :  { %v641_v23 = vrot.slane %v640_v18, 2  ;;  %v632_v24 = vrot.slane %v631_v19, 2  ;;  %339 = vmax.xlane.f32.xlu1 %v338_v20 }
 0x153   :  { %v624_v25 = vmax.f32 %v622_v16, %v623_v21  ;;  %v650_v26 = vrot.slane %v649_v22, 2 }
 0x154   :  { %v642_v27 = vmax.f32 %v640_v18, %v641_v23  ;;  %v633_v28 = vmax.f32 %v631_v19, %v632_v24 }
 0x155   :  { %v625_v29 = vrot.slane %v624_v25, 1  ;;  %v651_v30 = vmax.f32 %v649_v22, %v650_v26 }
 0x156   :  { %v643_v31 = vrot.slane %v642_v27, 1  ;;  %v634_v32 = vrot.slane %v633_v28, 1 }
 0x157   :  { %v2007_v33 = vmax.f32 %v624_v25, %v625_v29  ;;  %v652_v34 = vrot.slane %v651_v30, 1 }
 0x158   :  { %v2009_v35 = vmax.f32 %v642_v27, %v643_v31  ;;  %v2011_v36 = vmax.f32 %v633_v28, %v634_v32  ;;  %v2681_v31 = vmov 0.0  }
 0x159   :  { %v666_v37 = vsub.f32 %v1989_v1, %v2007_v33  ;;  %v2015_v42 = vmax.f32 %v651_v30, %v652_v34  ;;  %v654_v57 = vsub.f32 %v1943_v38, %v2007_v33  ;;  %v658_v7 = vsub.f32 %v1953_v43, %v2007_v33  ;;  %59 = vst.msk [vmem:[#allocation3] sm:$0xff] %vm2692_vm0, %v2681_v31 }
 0x15a   :  { %v668_v44 = vsub.f32 %v1992_v3, %v2009_v35  ;;  %v667_v45 = vsub.f32 %v1995_v5, %v2011_v36  ;;  %v655_v48 = vsub.f32 %v1945_v39, %v2011_v36  ;;  %v659_v49 = vsub.f32 %v1960_v47, %v2011_v36  ;;  %60 = vst.msk [vmem:[#allocation3 + $0x8] sm:$0xff] %vm2692_vm0, %v2681_v31 }
 0x15b   :  { %v669_v51 = vsub.f32 %v1999_v8, %v2015_v42  ;;  %v657_v52 = vsub.f32 %v1949_v41, %v2015_v42  ;;  %v661_v53 = vsub.f32 %v1966_v50, %v2015_v42  ;;  %v694_v55 = vmul.f32 1.442695, %v666_v37  ;;  %61 = vst.msk [vmem:[#allocation3 + $0x10] sm:$0xff] %vm2692_vm0, %v2681_v31  ;;  %62 = vst.msk [vmem:[#allocation3 + $0x18] sm:$0xff] %vm2692_vm0, %v2681_v31 }
 0x15c   :  { %v672_v59 = vmul.f32 1.442695, %v655_v48  ;;  %v680_v60 = vmul.f32 1.442695, %v659_v49  ;;  %v698_v2 = vmul.f32 1.442695, %v668_v44  ;;  %v656_v10 = vsub.f32 %v1947_v40, %v2009_v35 }
 0x15d   :  { %v676_v62 = vmul.f32 1.442695, %v657_v52  ;;  %1580 = vpow2.f32 %v694_v55  ;;  %v684_v0 = vmul.f32 1.442695, %v661_v53  ;;  %v696_v4 = vmul.f32 1.442695, %v667_v45 }
 0x15e   :  { %1582 = vpow2.f32 %v672_v59  ;;  %v700_v6 = vmul.f32 1.442695, %v669_v51  ;;  %v670_v9 = vmul.f32 1.442695, %v654_v57  ;;  %v660_v11 = vsub.f32 %v1958_v46, %v2009_v35 }
 0x15f   :  { %1584 = vpow2.f32 %v680_v60  ;;  %v663_v12 = vsub.f32 %v1979_v58, %v2011_v36  ;;  %v665_v13 = vsub.f32 %v1983_v61, %v2015_v42  ;;  %v678_v14 = vmul.f32 1.442695, %v658_v7  ;;  %v2096_v7 = vld [vmem:[#allocation2 + $0x8] sm:$0xff] }
 0x160   :  { %1586 = vpow2.f32 %v676_v62  ;;  %v674_v15 = vmul.f32 1.442695, %v656_v10  ;;  %v682_v16 = vmul.f32 1.442695, %v660_v11  ;;  %v662_v18 = vsub.f32 %v1973_v54, %v2007_v33 }
 0x161   :  { %1588 = vpow2.f32 %v684_v0  ;;  %v688_v17 = vmul.f32 1.442695, %v663_v12  ;;  %v692_v20 = vmul.f32 1.442695, %v665_v13  ;;  %v664_v21 = vsub.f32 %v1976_v56, %v2009_v35  ;;  %v2091_v0 = vld [vmem:[#allocation2] sm:$0xff] }
 0x162   :  { %1590 = vpow2.f32 %v698_v2  ;;  %v686_v23 = vmul.f32 1.442695, %v662_v18  ;;  %v848_v2 = vlaneseq  ;;  %v2718_v31 = vmov 0 }
 0x163   :  { %1592 = vpow2.f32 %v696_v4  ;;  %v690_v25 = vmul.f32 1.442695, %v664_v21  ;;  %v2120_v21 = vld [vmem:[#allocation2 + $0x18] sm:$0xff] }
 0x164   :  { %1594 = vpow2.f32 %v670_v9  ;;  %v2098_v9 = vshrl.u32 %v848_v2, 7  ;;  %2708 = vst [vmem:[#allocation21_spill] sm:$0xff] %v2120_v21 }
 0x165   :  { %1596 = vpow2.f32 %v700_v6 }
 0x166   :  { %1598 = vpow2.f32 %v678_v14  ;;  %2706 = vst [vmem:[#allocation19_spill] sm:$0xff] %v2098_v9  ;;  %v850_v12 = vadd.s32 8, %v2098_v9  ;;  %v2109_v14 = vld [vmem:[#allocation2 + $0x10] sm:$0xff] }
 0x167   :  { %v2045_v19 = vpop.eup %1580  ;;  %1600 = vpow2.f32 %v674_v15  ;;  %v851_v15 = vadd.s32 16, %v2098_v9 }
 0x168   :  { %v1583_v22 = vpop.eup %1582  ;;  %1602 = vpow2.f32 %v682_v16  ;;  %v879_v18 = vadd.s32 1, %v850_v12  ;;  %v878_v16 = vadd.s32 1, %v2098_v9 }
 0x169   :  { %v1585_v24 = vpop.eup %1584  ;;  %1604 = vpow2.f32 %v688_v17 }
 0x16a   :  { %v1587_v26 = vpop.eup %1586  ;;  %v1550_v27 = vpack.c.bf16 %v1585_v24, %v1583_v22  ;;  %1606 = vpow2.f32 %v692_v20  ;;  %v880_v22 = vadd.s32 1, %v851_v15  ;;  %v2127_v24 = vand.u32 127, %v848_v2 }
 0x16b   :  { %v1589_v28 = vpop.eup %1588  ;;  %1608 = vpow2.f32 %v686_v23 }
 0x16c   :  { %v2049_v29 = vpop.eup %1590  ;;  %1551 = vmatprep.subr.bf16.mxu0 %v1550_v27  ;;  %v1558_v30 = vpack.c.bf16 %v1589_v28, %v1587_v26  ;;  %1610 = vpow2.f32 %v690_v25  ;;  %v859_v26 = vmul.u32 16, %v850_v12  ;;  %v883_v27 = vmul.u32 16, %v879_v18 }
 0x16d   :  { %v2059_v32 = vpop.eup %1592  ;;  %v2153_v12 = vadd.s32 256, %v2127_v24  ;;  %v2185_v10 = vadd.s32 384, %v2127_v24 }
 0x16e   :  { %1559 = vmatprep.subr.bf16.mxu1 %v1558_v30  ;;  %v2061_v34 = vpop.eup %1594  ;;  %v860_v30 = vmul.u32 16, %v851_v15  ;;  %vm866_vm1 = vcmp.ge.s32.totalorder %v2127_v24, %v859_v26  ;;  %vm890_vm2 = vcmp.lt.s32.totalorder %v2127_v24, %v883_v27  ;;  %v2712_v15 = vmov 0 }
 0x16f   :  { %v2063_v37 = vpop.eup %1596  ;;  %vm2146_vm7 = vmand %vm866_vm1, %vm890_vm2  ;;  %vm868_vm12 = vcmp.ge.s32.totalorder %v2153_v12, %v859_v26  ;;  %vm892_vm13 = vcmp.lt.s32.totalorder %v2153_v12, %v883_v27 }
 0x170   :  { %v2065_v44 = vpop.eup %1598  ;;  %vm870_vm5 = vcmp.ge.s32.totalorder %v2127_v24, %v860_v30  ;;  %v2162_v18 = vsel %vm2146_vm7, %v2007_v33, -inf  ;;  %vm872_vm15 = vcmp.ge.s32.totalorder %v2153_v12, %v860_v30  ;;  %vm2187_vm2 = vmand %vm868_vm12, %vm892_vm13 }
 0x171   :  { %v2067_v45 = vpop.eup %1600  ;;  %v2719_v31 = vsel %vm2187_vm2, 4294967295, %v2718_v31  ;;  %v2210_v52 = vsel %vm2187_vm2, %v2009_v35, -inf }
 0x172   :  { %v2071_v49 = vpop.eup %1602 }
 0x173   :  { %v2073_v51 = vpop.eup %1604 }
 0x174   :  { %v2077_v53 = vpop.eup %1606 }
 0x175   :  { %v2081_v57 = vpop.eup %1608 }
 0x176   :  { %v2085_v60 = vpop.eup %1610 }
 0x1d3   :  { %v325_v4 = vpop.xlane.xlu0 %324 }
 0x1d4   :  { %v2094_v6 = vmax.f32 %v2091_v0, %v325_v4  ;;  %v884_v4 = vmul.u32 16, %v880_v22 }
 0x1d6   :  { %612 = vst.msk [vmem:[#allocation2] sm:$0xff] %vm2692_vm0, %v2094_v6  ;;  %347 = vperm.xlu0 %1578, %v2094_v6   ;;  %vm894_vm6 = vcmp.lt.s32.totalorder %v2127_v24, %v884_v4  ;;  %vm896_vm1 = vcmp.lt.s32.totalorder %v2153_v12, %v884_v4 }
 0x1d7   :  { %v330_v11 = vpop.xlane.xlu0 %329  ;;  %vm2169_vm11 = vmand %vm870_vm5, %vm894_vm6  ;;  %vm893_vm5 = vcmp.lt.s32.totalorder %v2185_v10, %v883_v27  ;;  %vm873_vm6 = vcmp.ge.s32.totalorder %v2185_v10, %v860_v30 }
 0x1d8   :  { %v2107_v13 = vmax.f32 %v2096_v7, %v330_v11  ;;  %v2194_v63 = vsel %vm2169_vm11, %v1973_v54, -inf }
 0x1d9   :  { %2720 = vst [vmem:[#allocation23_spill] sm:$0xff] %v2194_v63 }
 0x1da   :  { %613 = vst.msk [vmem:[#allocation2 + $0x8] sm:$0xff] %vm2692_vm0, %v2107_v13  ;;  %352 = vperm.xlu1 %1579, %v2107_v13  }
 0x1db   :  { %v335_v17 = vpop.xlane.xlu1 %334 }
 0x1dc   :  { %v2118_v20 = vmax.f32 %v2109_v14, %v335_v17  ;;  %v2138_v17 = vadd.s32 128, %v2127_v24 }
 0x1de   :  { %2707 = vst [vmem:[#allocation20_spill] sm:$0xff] %v2118_v20  ;;  %614 = vst.msk [vmem:[#allocation2 + $0x10] sm:$0xff] %vm2692_vm0, %v2118_v20  ;;  %357 = vperm.xlu1 %1579, %v2118_v20   ;;  %vm867_vm3 = vcmp.ge.s32.totalorder %v2138_v17, %v859_v26  ;;  %vm891_vm4 = vcmp.lt.s32.totalorder %v2138_v17, %v883_v27  ;;  %vm871_vm8 = vcmp.ge.s32.totalorder %v2138_v17, %v860_v30  ;;  %v2725_v20 = vmov 0 }
 0x1df   :  { %v340_v25 = vpop.xlane.xlu1 %339  ;;  %vm895_vm9 = vcmp.lt.s32.totalorder %v2138_v17, %v884_v4  ;;  %vm2155_vm10 = vmand %vm867_vm3, %vm891_vm4  ;;  %vm869_vm4 = vcmp.ge.s32.totalorder %v2185_v10, %v859_v26  ;;  %v852_v27 = vadd.s32 24, %v2098_v9 }
 0x1e0   :  { %v2130_v28 = vmax.f32 %v2120_v21, %v340_v25  ;;  %v2713_v15 = vsel %vm2155_vm10, 4294967295, %v2712_v15  ;;  %v2167_v22 = vsel %vm2155_vm10, %v2011_v36, -inf  ;;  %vm2175_vm14 = vmand %vm871_vm8, %vm895_vm9  ;;  %v882_v21 = vmul.u32 16, %v878_v16 }
 0x1e1   :  { %v939_v23 = vmax.f32 %v2162_v18, %v2167_v22  ;;  %v2199_v62 = vsel %vm2175_vm14, %v1979_v58, -inf  ;;  %vm2201_vm3 = vmand %vm872_vm15, %vm896_vm1  ;;  %vm897_vm8 = vcmp.lt.s32.totalorder %v2185_v10, %v884_v4 }
 0x1e2   :  { %2709 = vst [vmem:[#allocation22_spill] sm:$0xff] %v2130_v28  ;;  %615 = vst.msk [vmem:[#allocation2 + $0x18] sm:$0xff] %vm2692_vm0, %v2130_v28  ;;  %362 = vperm.xlu1 %1579, %v2130_v28   ;;  %v1097_v48 = vmax.f32 %v2194_v63, %v2199_v62  ;;  %v858_v28 = vmul.u32 16, %v2098_v9  ;;  %v2221_v26 = vsel %vm2201_vm3, %v1976_v56, -inf  ;;  %vm886_vm15 = vcmp.lt.s32.totalorder %v2127_v24, %v882_v21 }
 0x1e3   :  { %2721 = vst [vmem:[#allocation24_spill] sm:$0xff] %v2199_v62  ;;  %v940_v55 = vmax.f32 %v939_v23, %v2210_v52  ;;  %2724 = vst [vmem:[#allocation25_spill] sm:$0xff] %v2221_v26  ;;  %v881_v9 = vadd.s32 1, %v852_v27  ;;  %vm889_vm10 = vcmp.lt.s32.totalorder %v2185_v10, %v882_v21 }
 0x1e4   :  { %vm2224_vm9 = vmand %vm869_vm4, %vm893_vm5  ;;  %v1098_v4 = vmax.f32 %v1097_v48, %v2221_v26  ;;  %vm862_vm13 = vcmp.ge.s32.totalorder %v2127_v24, %v858_v28  ;;  %vm863_vm1 = vcmp.ge.s32.totalorder %v2138_v17, %v858_v28  ;;  %vm887_vm4 = vcmp.lt.s32.totalorder %v2138_v17, %v882_v21 }
 0x1e5   :  { %v2726_v20 = vsel %vm2224_vm9, 4294967295, %v2725_v20  ;;  %v2231_v23 = vsel %vm2224_vm9, %v2015_v42, -inf  ;;  %vm2234_vm12 = vmand %vm873_vm6, %vm897_vm8  ;;  %v885_v26 = vmul.u32 16, %v881_v9  ;;  %vm864_vm8 = vcmp.ge.s32.totalorder %v2153_v12, %v858_v28 }
 0x1e6   :  { %2727 = vst [vmem:[#allocation26_spill] sm:$0xff] %v2231_v23  ;;  %v941_v16 = vmax.f32 %v940_v55, %v2231_v23  ;;  %v2246_v55 = vsel %vm2234_vm12, %v1983_v61, -inf  ;;  %vm2249_vm5 = vmand %vm862_vm13, %vm886_vm15  ;;  %vm888_vm13 = vcmp.lt.s32.totalorder %v2153_v12, %v882_v21  ;;  %v2281_v9 = vsel %vm2175_vm14, %v2011_v36, -inf }
 0x1e7   :  { %2730 = vst [vmem:[#allocation27_spill] sm:$0xff] %v2246_v55  ;;  %v1099_v62 = vmax.f32 %v1098_v4, %v2246_v55  ;;  %vm2253_vm6 = vmand %vm863_vm1, %vm887_vm4  ;;  %v2260_v23 = vsel %vm2249_vm5, %v2007_v33, -inf  ;;  %vm898_vm1 = vcmp.lt.s32.totalorder %v2127_v24, %v885_v26  ;;  %vm899_vm0 = vcmp.lt.s32.totalorder %v2138_v17, %v885_v26 }
 0x1e8   :  { %2735 = vst [vmem:[#allocation28_spill] sm:$0xff] %v2260_v23  ;;  %v2265_v4 = vsel %vm2253_vm6, %v2011_v36, -inf  ;;  %2738 = vst [vmem:[#allocation31_spill] sm:$0xff] %v2281_v9  ;;  %vm865_vm2 = vcmp.ge.s32.totalorder %v2185_v10, %v858_v28  ;;  %v2345_v59 = vsel %vm2253_vm6, %v1945_v39, -inf  ;;  %vm702_vm6 = vcmask 261120  }
 0x1e9   :  { %2736 = vst [vmem:[#allocation29_spill] sm:$0xff] %v2265_v4  ;;  %v934_v55 = vmax.f32 %v2260_v23, %v2265_v4  ;;  %vm2285_vm9 = vmand %vm864_vm8, %vm888_vm13  ;;  %vm900_vm13 = vcmp.lt.s32.totalorder %v2153_v12, %v885_v26 }
 0x1ea   :  { %vm2317_vm8 = vmand %vm865_vm2, %vm889_vm10  ;;  %v2370_v30 = vsel %vm2285_vm9, %v1947_v40, -inf }
 0x1f5   :  { %942 = vmax.xlane.f32.xlu0 %v941_v16  ;;  %v861_v16 = vmul.u32 16, %v852_v27 }
 0x1f7   :  { %vm874_vm15 = vcmp.ge.s32.totalorder %v2127_v24, %v861_v16  ;;  %vm875_vm4 = vcmp.ge.s32.totalorder %v2138_v17, %v861_v16  ;;  %v2294_v24 = vsel %vm2285_vm9, %v2009_v35, -inf  ;;  %vm877_vm2 = vcmp.ge.s32.totalorder %v2185_v10, %v861_v16 }
 0x1f8   :  { %2741 = vst [vmem:[#allocation32_spill] sm:$0xff] %v2294_v24  ;;  %v935_v25 = vmax.f32 %v934_v55, %v2294_v24  ;;  %vm2303_vm14 = vmand %vm875_vm4, %vm899_vm0  ;;  %v2324_v55 = vsel %vm2317_vm8, %v2015_v42, -inf  ;;  %vm876_vm0 = vcmp.ge.s32.totalorder %v2153_v12, %v861_v16  ;;  %v2340_v24 = vsel %vm2249_vm5, %v1943_v38, -inf }
 0x1f9   :  { %1100 = vmax.xlane.f32.xlu0 %v1099_v62  ;;  %v2276_v62 = vsel %vm2169_vm11, %v2007_v33, -inf  ;;  %vm2296_vm11 = vmand %vm874_vm15, %vm898_vm1  ;;  %v2315_v28 = vsel %vm2303_vm14, %v2011_v36, -inf  ;;  %vm2758_vm9 = vnez %v2726_v20  ;;  %vm2789_vm15 = vcmask 7168  }
 0x1fa   :  { %2737 = vst [vmem:[#allocation30_spill] sm:$0xff] %v2276_v62  ;;  %v944_v17 = vmax.f32 %v2276_v62, %v2281_v9  ;;  %v2310_v21 = vsel %vm2296_vm11, %v2007_v33, -inf  ;;  %2746 = vst [vmem:[#allocation33_spill] sm:$0xff] %v2315_v28  ;;  %v2329_v9 = vsel %vm2201_vm3, %v2009_v35, -inf  ;;  %v936_v33 = vmax.f32 %v935_v25, %v2324_v55 }
 0x1fb   :  { %v949_v62 = vmax.f32 %v2310_v21, %v2315_v28  ;;  %vm2347_vm10 = vmand %vm876_vm0, %vm900_vm13  ;;  %v2354_v25 = vsel %vm2234_vm12, %v2015_v42, -inf  ;;  %vm901_vm3 = vcmp.lt.s32.totalorder %v2185_v10, %v885_v26  ;;  %v2375_v10 = vsel %vm2146_vm7, %v1953_v43, -inf }
 0x1fc   :  { %v945_v36 = vmax.f32 %v944_v17, %v2329_v9  ;;  %v2361_v63 = vsel %vm2347_vm10, %v2009_v35, -inf  ;;  %vm2752_vm12 = vnez %v2713_v15  ;;  %vm2382_vm5 = vmand %vm877_vm2, %vm901_vm3  ;;  %vm2756_vm7 = vnez %v2719_v31 }
 0x1fd   :  { %2751 = vst [vmem:[#allocation34_spill] sm:$0xff] %v2361_v63  ;;  %v950_v17 = vmax.f32 %v949_v62, %v2361_v63  ;;  %v2380_v35 = vsel %vm2752_vm12, %v1960_v47, -inf  ;;  %v2389_v16 = vsel %vm2382_vm5, %v2015_v42, -inf  ;;  %v2398_v15 = vsel %vm2756_vm7, %v1958_v46, -inf  ;;  %vm2791_vm1 = vmmov %vm2789_vm15 }
 0x1fe   :  { %v946_v48 = vmax.f32 %v945_v36, %v2354_v25  ;;  %2755 = vst [vmem:[#allocation35_spill] sm:$0xff] %v2389_v16  ;;  %v1092_v27 = vmax.f32 %v2375_v10, %v2380_v35  ;;  %v2403_v36 = vsel %vm2296_vm11, %v1989_v1, -inf  ;;  %v2408_v42 = vsel %vm2303_vm14, %v1995_v5, -inf  ;;  %vm2792_vm4 = vmmov %vm2791_vm1 }
 0x1ff   :  { %v951_v62 = vmax.f32 %v950_v17, %v2389_v16  ;;  %v1102_v11 = vmax.f32 %v2403_v36, %v2408_v42  ;;  %v2427_v4 = vsel %vm2758_vm9, %v1966_v50, -inf  ;;  %vm2793_vm11 = vmmov %vm2791_vm1 }
 0x200   :  { %v1093_v17 = vmax.f32 %v1092_v27, %v2398_v15  ;;  %vm2794_vm14 = vmmov %vm2791_vm1 }
 0x201   :  { %vm2796_vm0 = vmmov %vm2791_vm1 }
 0x202   :  { %v1094_v23 = vmax.f32 %v1093_v17, %v2427_v4  ;;  %vm2797_vm13 = vmmov %vm2796_vm0 }
 0x203   :  { %vm2799_vm2 = vmmov %vm2796_vm0 }
 0x204   :  { %vm2800_vm3 = vmmov %vm2796_vm0 }
 0x205   :  { %vm2801_vm12 = vmmov %vm2796_vm0 }
 0x206   :  { %937 = vmax.xlane.f32.xlu1 %v936_v33  ;;  %v1087_v33 = vmax.f32 %v2340_v24, %v2345_v59 }
 0x208   :  { %v1088_v2 = vmax.f32 %v1087_v33, %v2370_v30  ;;  %v2422_v33 = vsel %vm2347_vm10, %v1992_v3, -inf  ;;  %vm2798_vm10 = vmmov %vm2796_vm0 }
 0x209   :  { %2757 = vst [vmem:[#allocation36_spill] sm:$0xff] %v2422_v33 }
 0x20a   :  { %947 = vmax.xlane.f32.xlu1 %v946_v48  ;;  %v2413_v48 = vsel %vm2317_vm8, %v1949_v41, -inf  ;;  %vm2795_vm8 = vmmov %vm2791_vm1 }
 0x20b   :  { %v1089_v31 = vmax.f32 %v1088_v2, %v2413_v48  ;;  %v2434_v2 = vsel %vm2382_vm5, %v1999_v8, -inf }
 0x20c   :  { %2759 = vst [vmem:[#allocation37_spill] sm:$0xff] %v2434_v2 }
 0x20e   :  { %952 = vmax.xlane.f32.xlu1 %v951_v62  ;;  %v1103_v62 = vmax.f32 %v1102_v11, %v2422_v33 }
 0x210   :  { %v1104_v12 = vmax.f32 %v1103_v62, %v2434_v2 }
 0x212   :  { %1090 = vmax.xlane.f32.xlu1 %v1089_v31 }
 0x216   :  { %1095 = vmax.xlane.f32.xlu1 %v1094_v23 }
 0x21a   :  { %1105 = vmax.xlane.f32.xlu1 %v1104_v12 }
 0x255   :  { %v348_v27 = vpop.permute.xlu0 %347 }
 0x256   :  { %v365_v31 = vsub.f32 %v1943_v38, %v348_v27  ;;  %v366_v20 = vsub.f32 %v1945_v39, %v348_v27  ;;  %v367_v16 = vsub.f32 %v1947_v40, %v348_v27  ;;  %v368_v17 = vsub.f32 %v1949_v41, %v348_v27 }
 0x258   :  { %v381_v63 = vmul.f32 1.442695, %v365_v31  ;;  %v383_v11 = vmul.f32 1.442695, %v366_v20  ;;  %v385_v23 = vmul.f32 1.442695, %v367_v16 }
 0x259   :  { %v387_v33 = vmul.f32 1.442695, %v368_v17  ;;  %v353_v28 = vpop.permute.xlu1 %352 }
 0x25a   :  { %1612 = vpow2.f32 %v381_v63  ;;  %v369_v26 = vsub.f32 %v1953_v43, %v353_v28  ;;  %v370_v62 = vsub.f32 %v1960_v47, %v353_v28  ;;  %v371_v12 = vsub.f32 %v1958_v46, %v353_v28 }
 0x25b   :  { %1614 = vpow2.f32 %v383_v11  ;;  %v372_v38 = vsub.f32 %v1966_v50, %v353_v28 }
 0x25c   :  { %1616 = vpow2.f32 %v385_v23  ;;  %v389_v39 = vmul.f32 1.442695, %v369_v26  ;;  %v391_v40 = vmul.f32 1.442695, %v370_v62  ;;  %v393_v2 = vmul.f32 1.442695, %v371_v12 }
 0x25d   :  { %1618 = vpow2.f32 %v387_v33  ;;  %v395_v41 = vmul.f32 1.442695, %v372_v38  ;;  %v358_v27 = vpop.permute.xlu1 %357 }
 0x25e   :  { %1620 = vpow2.f32 %v389_v39  ;;  %v373_v16 = vsub.f32 %v1973_v54, %v358_v27  ;;  %v374_v63 = vsub.f32 %v1979_v58, %v358_v27  ;;  %v375_v43 = vsub.f32 %v1976_v56, %v358_v27 }
 0x25f   :  { %1622 = vpow2.f32 %v391_v40  ;;  %v376_v46 = vsub.f32 %v1983_v61, %v358_v27  ;;  %v2762_v39 = vpack.c.bf16 %v2071_v49, %v2067_v45  ;;  %v2765_v45 = vpack.c.bf16 %v2049_v29, %v2085_v60 }
 0x260   :  { %1624 = vpow2.f32 %v393_v2  ;;  %v397_v47 = vmul.f32 1.442695, %v373_v16  ;;  %v399_v50 = vmul.f32 1.442695, %v374_v63  ;;  %v401_v28 = vmul.f32 1.442695, %v375_v43 }
 0x261   :  { %1626 = vpow2.f32 %v395_v41  ;;  %v403_v31 = vmul.f32 1.442695, %v376_v46  ;;  %v363_v20 = vpop.permute.xlu1 %362  ;;  %v2763_v41 = vpack.c.bf16 %v2063_v37, %v2077_v53  ;;  %v1866_v29 = vmov 1.0  }
 0x262   :  { %1628 = vpow2.f32 %v397_v47  ;;  %v377_v33 = vsub.f32 %v1989_v1, %v363_v20  ;;  %v378_v17 = vsub.f32 %v1995_v5, %v363_v20  ;;  %v379_v54 = vsub.f32 %v1992_v3, %v363_v20 }
 0x263   :  { %1630 = vpow2.f32 %v399_v50  ;;  %v380_v56 = vsub.f32 %v1999_v8, %v363_v20  ;;  %v2760_v3 = vpack.c.bf16 %v2065_v44, %v2061_v34  ;;  %v2761_v8 = vpack.c.bf16 %v2059_v32, %v2073_v51 }
 0x264   :  { %v1613_v58 = vpop.eup %1612  ;;  %1632 = vpow2.f32 %v401_v28  ;;  %v405_v61 = vmul.f32 1.442695, %v377_v33  ;;  %v407_v2 = vmul.f32 1.442695, %v378_v17  ;;  %v409_v11 = vmul.f32 1.442695, %v379_v54 }
 0x265   :  { %v1615_v23 = vpop.eup %1614  ;;  %1634 = vpow2.f32 %v403_v31  ;;  %v411_v26 = vmul.f32 1.442695, %v380_v56  ;;  %v2764_v44 = vpack.c.bf16 %v2045_v19, %v2081_v57  ;;  %v2766_v19 = vmov 0.0  }
 0x266   :  { %v1617_v62 = vpop.eup %1616  ;;  %1636 = vpow2.f32 %v405_v61  ;;  %477 = vmatprep.mubr.f32.mxu0 %v1615_v23 }
 0x267   :  { %v1619_v12 = vpop.eup %1618  ;;  %1638 = vpow2.f32 %v407_v2  ;;  %478 = vmatmul.mubr.f32.vlgmr.msra.gmra.mrb[8].mxu0 %v1613_v58 }
 0x268   :  { %v1621_v1 = vpop.eup %1620  ;;  %1640 = vpow2.f32 %v409_v11  ;;  %562 = vmatprep.mubr.f32.mxu1 %v1619_v12  ;;  %1553 = vmatpush1.bf16.msra.mxu0 %v2760_v3 }
 0x269   :  { %v1623_v5 = vpop.eup %1622  ;;  %1642 = vpow2.f32 %v411_v26  ;;  %563 = vmatmul.mubr.f32.vlgmr.msra.gmra.mrb[8].mxu1 %v1617_v62  ;;  %1555 = vmatprep.subr.bf16.mxu0 %v2761_v8 }
 0x26a   :  { %v1625_v38 = vpop.eup %1624  ;;  %1561 = vmatpush1.bf16.msra.mxu1 %v2762_v39  ;;  %482 = vmatprep.mubr.f32.mxu0 %v1623_v5 }
 0x26b   :  { %v1627_v40 = vpop.eup %1626  ;;  %1563 = vmatprep.subr.bf16.mxu1 %v2763_v41  ;;  %483 = vmatmul.mubr.f32.gmra.mrb[10].mxu0 %v1621_v1 }
 0x26c   :  { %v1629_v34 = vpop.eup %1628  ;;  %567 = vmatprep.mubr.f32.mxu1 %v1627_v40  ;;  %1557 = vmatpush1.bf16.msra.mxu0 %v2764_v44  ;;  %v2767_v40 = vsub.f32 %v2091_v0, %v2094_v6  ;;  %v2768_v44 = vsub.f32 %v2096_v7, %v2107_v13  ;;  %v2771_v6 = vld [vmem:[#allocation21_spill] sm:$0xff] }
 0x26d   :  { %v1631_v32 = vpop.eup %1630  ;;  %568 = vmatmul.mubr.f32.gmra.mrb[10].mxu1 %v1625_v38 }
 0x26e   :  { %v1633_v51 = vpop.eup %1632  ;;  %1565 = vmatpush1.bf16.msra.mxu1 %v2765_v45  ;;  %487 = vmatprep.mubr.f32.mxu0 %v1631_v32  ;;  %v591_v41 = vmul.f32 1.442695, %v2767_v40  ;;  %v593_v32 = vmul.f32 1.442695, %v2768_v44 }
 0x26f   :  { %v1635_v49 = vpop.eup %1634  ;;  %488 = vmatmul.mubr.f32.gmra.mrb[12].mxu0 %v1629_v34 }
 0x270   :  { %v1637_v27 = vpop.eup %1636  ;;  %572 = vmatprep.mubr.f32.mxu1 %v1635_v49  ;;  %v2769_v49 = vld [vmem:[#allocation20_spill] sm:$0xff] }
 0x271   :  { %v1639_v37 = vpop.eup %1638  ;;  %573 = vmatmul.mubr.f32.gmra.mrb[12].mxu1 %v1633_v51 }
 0x272   :  { %v1641_v53 = vpop.eup %1640  ;;  %492 = vmatprep.mubr.f32.mxu0 %v1639_v37 }
 0x273   :  { %v1643_v16 = vpop.eup %1642  ;;  %493 = vmatmul.mubr.f32.gmra.mrb[14].mxu0 %v1637_v27  ;;  %v2770_v27 = vsub.f32 %v2109_v14, %v2769_v49  ;;  %v2776_v14 = vld [vmem:[#allocation24_spill] sm:$0xff] }
 0x274   :  { %577 = vmatprep.mubr.f32.mxu1 %v1643_v16  ;;  %770 = vmatprep.mubr.f32.mxu0 %v2766_v19 }
 0x275   :  { %578 = vmatmul.mubr.f32.gmra.mrb[14].mxu1 %v1641_v53  ;;  %v595_v37 = vmul.f32 1.442695, %v2770_v27  ;;  %v2772_v53 = vld [vmem:[#allocation22_spill] sm:$0xff] }
 0x276   :  { %841 = vmatprep.mubr.f32.mxu1 %v2766_v19  ;;  %v2773_v16 = vsub.f32 %v2771_v6, %v2772_v53  ;;  %v2774_v19 = vld [vmem:[#allocation26_spill] sm:$0xff]  ;;  %v2784_v53 = vld [vmem:[#allocation33_spill] sm:$0xff] }
 0x277   :  { %1284 = vmatmul.mubr.msk.f32.vlgmr.msra.gmra.mrb[16].mxu0 %vm702_vm6, %v1866_v29 }
 0x279   :  { %1285 = vmatmul.mubr.msk.f32.vlgmr.msra.gmra.mrb[16].mxu1 %vm702_vm6, %v1866_v29 }
 0x282   :  { %v2499_v39 = vpop.xlane.xlu0 %942 }
 0x283   :  { %v974_v34 = vsub.f32 %v2162_v18, %v2499_v39  ;;  %v975_v51 = vsub.f32 %v2167_v22, %v2499_v39  ;;  %v976_v0 = vsub.f32 %v2210_v52, %v2499_v39  ;;  %v597_v18 = vmul.f32 1.442695, %v2773_v16  ;;  %v2775_v22 = vld [vmem:[#allocation23_spill] sm:$0xff]  ;;  %v2777_v52 = vld [vmem:[#allocation25_spill] sm:$0xff] }
 0x284   :  { %v977_v7 = vsub.f32 %v2774_v19, %v2499_v39 }
 0x285   :  { %v994_v13 = vmul.f32 1.442695, %v974_v34 }
 0x286   :  { %v2511_v45 = vpop.xlane.xlu0 %1100 }
 0x287   :  { %v1115_v29 = vsub.f32 %v2775_v22, %v2511_v45 }
 0x293   :  { %v2473_v57 = vpop.xlane.xlu1 %937 }
 0x297   :  { %v2475_v60 = vpop.xlane.xlu1 %947 }
 0x29b   :  { %v2477_v63 = vpop.xlane.xlu1 %952 }
 0x29c   :  { %v983_v16 = vsub.f32 %v2784_v53, %v2477_v63 }
 0x29f   :  { %v2479_v43 = vpop.xlane.xlu1 %1090 }
 0x2a0   :  { %v1107_v46 = vsub.f32 %v2340_v24, %v2479_v43  ;;  %v1108_v47 = vsub.f32 %v2345_v59, %v2479_v43  ;;  %v1109_v50 = vsub.f32 %v2370_v30, %v2479_v43  ;;  %v1110_v28 = vsub.f32 %v2413_v48, %v2479_v43 }
 0x2a2   :  { %v1123_v31 = vmul.f32 1.442695, %v1107_v46  ;;  %v1125_v20 = vmul.f32 1.442695, %v1108_v47  ;;  %v1127_v33 = vmul.f32 1.442695, %v1109_v50  ;;  %v1116_v47 = vsub.f32 %v2776_v14, %v2511_v45 }
 0x2a3   :  { %v1129_v17 = vmul.f32 1.442695, %v1110_v28  ;;  %v2489_v54 = vpop.xlane.xlu1 %1095  ;;  %v996_v46 = vmul.f32 1.442695, %v975_v51  ;;  %v998_v50 = vmul.f32 1.442695, %v976_v0  ;;  %v1117_v28 = vsub.f32 %v2777_v52, %v2511_v45 }
 0x2a4   :  { %1644 = vpow2.f32 %v1123_v31  ;;  %v1111_v56 = vsub.f32 %v2375_v10, %v2489_v54  ;;  %v1112_v24 = vsub.f32 %v2380_v35, %v2489_v54  ;;  %v1113_v59 = vsub.f32 %v2398_v15, %v2489_v54 }
 0x2a5   :  { %1646 = vpow2.f32 %v1125_v20  ;;  %v1114_v30 = vsub.f32 %v2427_v4, %v2489_v54  ;;  %v1000_v31 = vmul.f32 1.442695, %v977_v7  ;;  %v2778_v20 = vld [vmem:[#allocation27_spill] sm:$0xff] }
 0x2a6   :  { %1648 = vpow2.f32 %v1127_v33  ;;  %v1131_v48 = vmul.f32 1.442695, %v1111_v56  ;;  %v1133_v58 = vmul.f32 1.442695, %v1112_v24  ;;  %v1135_v61 = vmul.f32 1.442695, %v1113_v59 }
 0x2a7   :  { %1650 = vpow2.f32 %v1129_v17  ;;  %v1137_v2 = vmul.f32 1.442695, %v1114_v30  ;;  %v1118_v33 = vsub.f32 %v2778_v20, %v2511_v45  ;;  %v1139_v17 = vmul.f32 1.442695, %v1115_v29  ;;  %v2779_v56 = vld [vmem:[#allocation28_spill] sm:$0xff]  ;;  %v2780_v30 = vld [vmem:[#allocation29_spill] sm:$0xff] }
 0x2a8   :  { %1652 = vpow2.f32 %v1131_v48  ;;  %v970_v24 = vsub.f32 %v2779_v56, %v2473_v57  ;;  %v1141_v59 = vmul.f32 1.442695, %v1116_v47  ;;  %v971_v48 = vsub.f32 %v2780_v30, %v2473_v57  ;;  %v2785_v47 = vld [vmem:[#allocation34_spill] sm:$0xff]  ;;  %v2786_v56 = vld [vmem:[#allocation35_spill] sm:$0xff] }
 0x2a9   :  { %1654 = vpow2.f32 %v1133_v58  ;;  %v1143_v58 = vmul.f32 1.442695, %v1117_v28  ;;  %v1012_v30 = vmul.f32 1.442695, %v983_v16 }
 0x2aa   :  { %1656 = vpow2.f32 %v1135_v61  ;;  %v2781_v61 = vld [vmem:[#allocation32_spill] sm:$0xff] }
 0x2ab   :  { %1658 = vpow2.f32 %v1137_v2  ;;  %v972_v2 = vsub.f32 %v2781_v61, %v2473_v57 }
 0x2ac   :  { %1660 = vpow2.f32 %v591_v41 }
 0x2ad   :  { %1662 = vpow2.f32 %v593_v32 }
 0x2ae   :  { %v1645_v10 = vpop.eup %1644  ;;  %1664 = vpow2.f32 %v595_v37 }
 0x2af   :  { %v1647_v11 = vpop.eup %1646  ;;  %1666 = vpow2.f32 %v597_v18 }
 0x2b0   :  { %v1649_v35 = vpop.eup %1648  ;;  %v1155_v23 = vadd.f32 %v1647_v11, %v1645_v10  ;;  %1668 = vpow2.f32 %v994_v13  ;;  %v1145_v10 = vmul.f32 1.442695, %v1118_v33  ;;  %v973_v11 = vsub.f32 %v2324_v55, %v2473_v57 }
 0x2b1   :  { %v1651_v26 = vpop.eup %1650  ;;  %1670 = vpow2.f32 %v996_v46 }
 0x2b2   :  { %v1653_v15 = vpop.eup %1652  ;;  %v1156_v62 = vadd.f32 %v1649_v35, %v1155_v23  ;;  %1672 = vpow2.f32 %v998_v50  ;;  %v986_v35 = vmul.f32 1.442695, %v970_v24  ;;  %v2782_v23 = vld [vmem:[#allocation30_spill] sm:$0xff]  ;;  %v992_v55 = vmul.f32 1.442695, %v973_v11 }
 0x2b3   :  { %v1655_v12 = vpop.eup %1654  ;;  %1674 = vpow2.f32 %v1000_v31  ;;  %v984_v50 = vsub.f32 %v2785_v47, %v2477_v63  ;;  %v985_v24 = vsub.f32 %v2786_v56, %v2477_v63 }
 0x2b4   :  { %v1157_v1 = vadd.f32 %v1651_v26, %v1156_v62  ;;  %v1160_v4 = vadd.f32 %v1655_v12, %v1653_v15  ;;  %v1657_v3 = vpop.eup %1656  ;;  %1676 = vpow2.f32 %v1139_v17  ;;  %v978_v26 = vsub.f32 %v2782_v23, %v2475_v60  ;;  %v2541_v15 = vpop.xlane.xlu1 %1105  ;;  %v2783_v12 = vld [vmem:[#allocation31_spill] sm:$0xff] }
 0x2b5   :  { %v1659_v8 = vpop.eup %1658  ;;  %1678 = vpow2.f32 %v1141_v59  ;;  %v988_v62 = vmul.f32 1.442695, %v971_v48  ;;  %v1120_v34 = vsub.f32 %v2408_v42, %v2541_v15  ;;  %v982_v42 = vsub.f32 %v2310_v21, %v2477_v63 }
 0x2b6   :  { %1158 = vadd.xlane.f32.xlu0 %v1157_v1  ;;  %v1161_v5 = vadd.f32 %v1657_v3, %v1160_v4  ;;  %v979_v1 = vsub.f32 %v2783_v12, %v2475_v60  ;;  %v1661_v4 = vpop.eup %1660  ;;  %1680 = vpow2.f32 %v1143_v58  ;;  %v990_v3 = vmul.f32 1.442695, %v972_v2  ;;  %v584_v58 = vld [vmem:[#allocation3 + $0x8] sm:$0xff]  ;;  %v2788_v12 = vld [vmem:[#allocation37_spill] sm:$0xff] }
 0x2b7   :  { %1682 = vpow2.f32 %v1145_v10  ;;  %v1002_v41 = vmul.f32 1.442695, %v978_v26  ;;  %v1149_v13 = vmul.f32 1.442695, %v1120_v34  ;;  %v1010_v59 = vmul.f32 1.442695, %v982_v42 }
 0x2b8   :  { %v1162_v38 = vadd.f32 %v1659_v8, %v1161_v5  ;;  %v980_v5 = vsub.f32 %v2329_v9, %v2475_v60  ;;  %v2547_v8 = vpop.eup %1662  ;;  %1684 = vpow2.f32 %v986_v35  ;;  %v981_v9 = vsub.f32 %v2354_v25, %v2475_v60  ;;  %v583_v25 = vld [vmem:[#allocation3] sm:$0xff]  ;;  %v2787_v2 = vld [vmem:[#allocation36_spill] sm:$0xff] }
 0x2b9   :  { %v2551_v40 = vpop.eup %1664  ;;  %1686 = vpow2.f32 %v988_v62  ;;  %v1004_v51 = vmul.f32 1.442695, %v979_v1  ;;  %v599_v31 = vmul.f32 %v1661_v4, %v583_v25  ;;  %v1121_v10 = vsub.f32 %v2787_v2, %v2541_v15 }
 0x2ba   :  { %1163 = vadd.xlane.f32.xlu1 %v1162_v38  ;;  %v1119_v38 = vsub.f32 %v2403_v36, %v2541_v15  ;;  %v2555_v32 = vpop.eup %1666  ;;  %1688 = vpow2.f32 %v990_v3  ;;  %v1006_v36 = vmul.f32 1.442695, %v980_v5  ;;  %v1008_v14 = vmul.f32 1.442695, %v981_v9 }
 0x2bb   :  { %v2559_v27 = vpop.eup %1668  ;;  %1690 = vpow2.f32 %v992_v55  ;;  %v1014_v62 = vmul.f32 1.442695, %v984_v50  ;;  %v1122_v1 = vsub.f32 %v2788_v12, %v2541_v15  ;;  %v1016_v9 = vmul.f32 1.442695, %v985_v24 }
 0x2bc   :  { %v2561_v6 = vpop.eup %1670  ;;  %v1147_v18 = vmul.f32 1.442695, %v1119_v38  ;;  %1692 = vpow2.f32 %v1002_v41  ;;  %v600_v38 = vmul.f32 %v2547_v8, %v584_v58  ;;  %v2790_v8 = vld [vmem:[#allocation19_spill] sm:$0xff] }
 0x2bd   :  { %v2567_v7 = vpop.eup %1672  ;;  %1694 = vpow2.f32 %v1004_v51 }
 0x2be   :  { %v2569_v46 = vpop.eup %1674  ;;  %1696 = vpow2.f32 %v1006_v36 }
 0x2bf   :  { %v2573_v52 = vpop.eup %1676  ;;  %1698 = vpow2.f32 %v1147_v18  ;;  %v1153_v18 = vmul.f32 1.442695, %v1122_v1 }
 0x2c0   :  { %v2575_v17 = vpop.eup %1678  ;;  %1700 = vpow2.f32 %v1149_v13  ;;  %v956_v13 = vsub.s32 0, %v2790_v8 }
 0x2c1   :  { %v2579_v61 = vpop.eup %1680  ;;  %1702 = vpow2.f32 %v1008_v14 }
 0x2c2   :  { %v2583_v26 = vpop.eup %1682 }
 0x2c3   :  { %v1685_v5 = vpop.eup %1684 }
 0x33a   :  { %v1398_v44 = vpop.f32.mrb[8].mxu0 }
 0x33b   :  { %v1399_v49 = vpop.f32.mrb[9].mxu0 }
 0x33c   :  { %v1442_v37 = vpop.f32.mrb[8].mxu1  ;;  %v1400_v0 = vadd.f32 %v1399_v49, %v1398_v44  ;;  %v1687_v44 = vpop.eup %1686  ;;  %v585_v49 = vld [vmem:[#allocation3 + $0x10] sm:$0xff] }
 0x33d   :  { %v1443_v19 = vpop.f32.mrb[9].mxu1  ;;  %v1689_v36 = vpop.eup %1688  ;;  %v601_v14 = vmul.f32 %v2551_v40, %v585_v49 }
 0x33e   :  { %v1444_v22 = vadd.f32 %v1443_v19, %v1442_v37  ;;  %v1401_v29 = vpop.f32.mrb[10].mxu0  ;;  %v1151_v37 = vmul.f32 1.442695, %v1121_v10  ;;  %v1691_v16 = vpop.eup %1690 }
 0x33f   :  { %v1402_v21 = vpop.f32.mrb[11].mxu0 }
 0x340   :  { %v565_v28 = vadd.f32 %v1444_v22, %v1400_v0  ;;  %v1445_v20 = vpop.f32.mrb[10].mxu1  ;;  %v1403_v33 = vadd.f32 %v1402_v21, %v1401_v29  ;;  %v1693_v22 = vpop.eup %1692  ;;  %v586_v21 = vld [vmem:[#allocation3 + $0x18] sm:$0xff] }
 0x341   :  { %v1446_v48 = vpop.f32.mrb[11].mxu1 }
 0x342   :  { %v603_v11 = vadd.f32 %v599_v31, %v565_v28  ;;  %v1447_v35 = vadd.f32 %v1446_v48, %v1445_v20  ;;  %v1404_v23 = vpop.f32.mrb[12].mxu0  ;;  %v1695_v28 = vpop.eup %1694 }
 0x343   :  { %v1405_v4 = vpop.f32.mrb[13].mxu0  ;;  %v1159_v3 = vpop.xlane.xlu0 %1158 }
 0x344   :  { %608 = vst.msk [vmem:[#allocation3] sm:$0xff] %vm2789_vm15, %v603_v11  ;;  %v570_v55 = vadd.f32 %v1447_v35, %v1403_v33  ;;  %v1448_v41 = vpop.f32.mrb[12].mxu1  ;;  %v1406_v34 = vadd.f32 %v1405_v4, %v1404_v23  ;;  %1704 = vlog2.f32 %v1159_v3  ;;  %v1697_v20 = vpop.eup %1696  ;;  %v1165_v23 = vadd.f32 %v2575_v17, %v2573_v52 }
 0x345   :  { %1706 = vpow2.f32 %v1010_v59  ;;  %v1449_v51 = vpop.f32.mrb[13].mxu1  ;;  %v1699_v59 = vpop.eup %1698 }
 0x346   :  { %1708 = vpow2.f32 %v1012_v30  ;;  %v604_v0 = vadd.f32 %v600_v38, %v570_v55  ;;  %v1450_v42 = vadd.f32 %v1449_v51, %v1448_v41  ;;  %v1407_v53 = vpop.f32.mrb[14].mxu0  ;;  %v602_v30 = vmul.f32 %v2555_v32, %v586_v21  ;;  %v1701_v40 = vpop.eup %1700 }
 0x347   :  { %1710 = vpow2.f32 %v1014_v62  ;;  %v1164_v19 = vpop.xlane.xlu1 %1163  ;;  %v1408_v25 = vpop.f32.mrb[15].mxu0 }
 0x348   :  { %609 = vst.msk [vmem:[#allocation3 + $0x8] sm:$0xff] %vm2791_vm1, %v604_v0  ;;  %v575_v29 = vadd.f32 %v1450_v42, %v1406_v34  ;;  %v1451_v47 = vpop.f32.mrb[14].mxu1  ;;  %1712 = vlog2.f32 %v1164_v19  ;;  %v1409_v50 = vadd.f32 %v1408_v25, %v1407_v53  ;;  %v1703_v62 = vpop.eup %1702  ;;  %v1170_v42 = vadd.f32 %v1701_v40, %v1699_v59 }
 0x349   :  { %1714 = vpow2.f32 %v1016_v9  ;;  %v1452_v31 = vpop.f32.mrb[15].mxu1 }
 0x34a   :  { %1716 = vpow2.f32 %v1151_v37  ;;  %v605_v33 = vadd.f32 %v601_v14, %v575_v29  ;;  %v1453_v56 = vadd.f32 %v1452_v31, %v1451_v47  ;;  %v772_v24 = vpop.f32.mrb[16].mxu0 }
 0x34b   :  { %1718 = vpow2.f32 %v1153_v18  ;;  %v957_v48 = vrot.slane %v772_v24, %v956_v13  ;;  %v774_v58 = vpop.f32.mrb[17].mxu0  ;;  %v1199_v2 = vld [vmem:[#allocation3] sm:$0xff] }
 0x34c   :  { %610 = vst.msk [vmem:[#allocation3 + $0x10] sm:$0xff] %vm2792_vm4, %v605_v33  ;;  %v580_v10 = vadd.f32 %v1453_v56, %v1409_v50  ;;  %v843_v11 = vpop.f32.mrb[16].mxu1  ;;  %v961_v35 = vrot.slane %v774_v58, %v956_v13  ;;  %1720 = vlog2.f32 %v1199_v2 }
 0x34d   :  { %v965_v12 = vrot.slane %v843_v11, %v956_v13  ;;  %v845_v1 = vpop.f32.mrb[17].mxu1  ;;  %v1018_v4 = vmul.f32 %v1685_v5, %v957_v48  ;;  %v1022_v3 = vmul.f32 %v2559_v27, %v957_v48  ;;  %v1026_v32 = vmul.f32 %v1693_v22, %v957_v48 }
 0x34e   :  { %v1705_v55 = vpop.eup %1704  ;;  %v606_v38 = vadd.f32 %v602_v30, %v580_v10  ;;  %v969_v41 = vrot.slane %v845_v1, %v956_v13  ;;  %v1019_v34 = vmul.f32 %v1687_v44, %v961_v35  ;;  %v1023_v9 = vmul.f32 %v2561_v6, %v961_v35 }
 0x34f   :  { %v1707_v51 = vpop.eup %1706  ;;  %v1176_v49 = vmul.f32 0.6931472, %v1705_v55  ;;  %v1020_v37 = vmul.f32 %v1689_v36, %v965_v12  ;;  %v1027_v0 = vmul.f32 %v1695_v28, %v961_v35  ;;  %v1024_v5 = vmul.f32 %v2567_v7, %v965_v12  ;;  %v1200_v8 = vld [vmem:[#allocation3 + $0x8] sm:$0xff] }
 0x350   :  { %v1709_v52 = vpop.eup %1708  ;;  %611 = vst.msk [vmem:[#allocation3 + $0x18] sm:$0xff] %vm2793_vm11, %v606_v38  ;;  %v1021_v17 = vmul.f32 %v1691_v16, %v969_v41  ;;  %v1034_v53 = vadd.f32 %v1019_v34, %v1018_v4  ;;  %v1039_v27 = vadd.f32 %v1023_v9, %v1022_v3  ;;  %v1025_v44 = vmul.f32 %v2569_v46, %v969_v41  ;;  %v1197_v38 = vld [vmem:[#allocation2 + $0x10] sm:$0xff] }
 0x351   :  { %v1711_v18 = vpop.eup %1710  ;;  %v1183_v19 = vadd.f32 %v1176_v49, %v2479_v43  ;;  %v1028_v25 = vmul.f32 %v1697_v20, %v965_v12  ;;  %v1044_v6 = vadd.f32 %v1027_v0, %v1026_v32  ;;  %v1030_v29 = vmul.f32 %v1707_v51, %v957_v48  ;;  %v1198_v49 = vld [vmem:[#allocation2 + $0x18] sm:$0xff] }
 0x352   :  { %v1713_v13 = vpop.eup %1712  ;;  %v1035_v36 = vadd.f32 %v1034_v53, %v1020_v37  ;;  %v1040_v22 = vadd.f32 %v1039_v27, %v1024_v5  ;;  %v1031_v14 = vmul.f32 %v1709_v52, %v961_v35  ;;  %v1029_v50 = vmul.f32 %v1703_v62, %v969_v41  ;;  %v1195_v35 = vld [vmem:[#allocation2] sm:$0xff] }
 0x353   :  { %v1715_v47 = vpop.eup %1714  ;;  %1188 = vst.msk [vmem:[#allocation5] sm:$0xff] %vm2794_vm14, %v1183_v19  ;;  %v1178_v16 = vmul.f32 0.6931472, %v1713_v13  ;;  %v1045_v7 = vadd.f32 %v1044_v6, %v1028_v25  ;;  %v1032_v21 = vmul.f32 %v1711_v18, %v965_v12  ;;  %v1201_v28 = vld [vmem:[#allocation3 + $0x10] sm:$0xff]  ;;  %1722 = vlog2.f32 %v1200_v8 }
 0x354   :  { %v1717_v31 = vpop.eup %1716  ;;  %v1036_v43 = vadd.f32 %v1035_v36, %v1021_v17  ;;  %v1041_v33 = vadd.f32 %v1040_v22, %v1025_v44  ;;  %v1049_v46 = vadd.f32 %v1031_v14, %v1030_v29  ;;  %1724 = vlog2.f32 %v1201_v28 }
 0x355   :  { %v1719_v20 = vpop.eup %1718  ;;  %v1184_v56 = vadd.f32 %v1178_v16, %v2489_v54  ;;  %v1046_v24 = vadd.f32 %v1045_v7, %v1029_v50  ;;  %v1033_v30 = vmul.f32 %v1715_v47, %v969_v41  ;;  %v1171_v10 = vadd.f32 %v1717_v31, %v1170_v42 }
 0x356   :  { %v1721_v59 = vpop.eup %1720  ;;  %1037 = vadd.xlane.f32.xlu0 %v1036_v43  ;;  %1042 = vadd.xlane.f32.xlu1 %v1041_v33  ;;  %v1050_v48 = vadd.f32 %v1049_v46, %v1032_v21  ;;  %v1166_v11 = vadd.f32 %v2579_v61, %v1165_v23  ;;  %v1196_v61 = vld [vmem:[#allocation2 + $0x8] sm:$0xff] }
 0x357   :  { %1189 = vst.msk [vmem:[#allocation5 + $0x8] sm:$0xff] %vm2795_vm8, %v1184_v56  ;;  %v1202_v58 = vld [vmem:[#allocation3 + $0x18] sm:$0xff]  ;;  %v1204_v2 = vmul.f32 0.6931472, %v1721_v59  ;;  %v1172_v12 = vadd.f32 %v1719_v20, %v1171_v10 }
 0x358   :  { %v1051_v40 = vadd.f32 %v1050_v48, %v1033_v30  ;;  %1726 = vlog2.f32 %v1202_v58  ;;  %v1167_v1 = vadd.f32 %v2583_v26, %v1166_v11 }
 0x359   :  { %v1211_v62 = vadd.f32 %v1204_v2, %v1195_v35 }
 0x35a   :  { %1047 = vadd.xlane.f32.xlu0 %v1046_v24  ;;  %1052 = vadd.xlane.f32.xlu1 %v1051_v40  ;;  %v1227_v54 = vld [vmem:[#allocation5] sm:$0xff] }
 0x35b   :  { %1215 = vst.msk [vmem:[#allocation11] sm:$0xff] %vm2796_vm0, %v1211_v62 }
 0x35c   :  { %1231 = vst.msk [vmem:[#allocation14] sm:$0xff] %vm2797_vm13, %v1227_v54 }
 0x35d   :  { %v1723_v4 = vpop.eup %1722 }
 0x35e   :  { %1173 = vadd.xlane.f32.xlu1 %v1172_v12  ;;  %1168 = vadd.xlane.f32.xlu0 %v1167_v1  ;;  %v1228_v3 = vld [vmem:[#allocation5 + $0x8] sm:$0xff]  ;;  %v1725_v32 = vpop.eup %1724  ;;  %v1206_v55 = vmul.f32 0.6931472, %v1723_v4 }
 0x35f   :  { %1232 = vst.msk [vmem:[#allocation14 + $0x8] sm:$0xff] %vm2798_vm10, %v1228_v3  ;;  %v1208_v23 = vmul.f32 0.6931472, %v1725_v32 }
 0x360   :  { %v1212_v41 = vadd.f32 %v1206_v55, %v1196_v61 }
 0x361   :  { %v1213_v9 = vadd.f32 %v1208_v23, %v1197_v38 }
 0x362   :  { %v1727_v34 = vpop.eup %1726  ;;  %1216 = vst.msk [vmem:[#allocation11 + $0x8] sm:$0xff] %vm2799_vm2, %v1212_v41 }
 0x363   :  { %v1210_v51 = vmul.f32 0.6931472, %v1727_v34  ;;  %1217 = vst.msk [vmem:[#allocation11 + $0x10] sm:$0xff] %vm2800_vm3, %v1213_v9 }
 0x365   :  { %v1214_v26 = vadd.f32 %v1210_v51, %v1198_v49 }
 0x367   :  { %1218 = vst.msk [vmem:[#allocation11 + $0x18] sm:$0xff] %vm2801_vm12, %v1214_v26 }
 0x368   :  { %1795 = shalt.err (!%p1792_p6)
}
 0x369   :  { %s1796_s18 = scalar_lea.hbm %s2678_s2, 512 }
 0x36a   :  { %p1797_p7 = scmp.ne.s32.totalorder %s2678_s2, %s1796_s18  ;;  %p1800_p8 = scmp.lt.u32.totalorder %s1796_s18, %s2678_s2 }
 0x36c   :  { %p1802_p9 = pnand %p1800_p8, %p1797_p7 }
 0x36e   :  { %1805 = shalt.err (!%p1802_p9)
}
 0x36f   :  { %1246 = dma.vmem_to_hbm [thread:$0]  %s1241_s14, 512, %s2678_s2, [#allocation8], %s1859_s25, %s1859_s25, %s1860_s26   ;;  %vm2802_vm5 = vmmov %vm2796_vm0 }
 0x370   :  { %vm2803_vm7 = vmmov %vm2796_vm0  ;;  %s1868_s2 = smov [#allocation12]   ;;  %s1869_s28 = smov [#allocation14]  }
 0x371   :  { %vm2804_vm9 = vmmov %vm2796_vm0  ;;  %s1252_s27 = sshll.u32 %s1868_s2, 4  ;;  %s1264_s29 = sshll.u32 %s1869_s28, 4  ;;  %s1253_s27 = int_to_ptr.vmem [resolvable:$true] %s1252_s27  ;;  %s1265_s29 = int_to_ptr.vmem [resolvable:$true] %s1264_s29 }
 0x372   :  { %vm2805_vm6 = vmmov %vm2796_vm0  ;;  %s1806_s30 = scalar_lea.vmem %s1253_s27, 512  ;;  %p1811_p11 = scmp.lt.s32.totalorder %s1253_s27, %s1253_s27 }
 0x373   :  { %vm2806_vm15 = vmmov %vm2796_vm0  ;;  %p1807_p10 = scmp.ne.s32.totalorder %s1253_s27, %s1806_s30  ;;  %p1812_p12 = scmp.lt.s32.totalorder %s1806_s30, %s1806_s30 }
 0x374   :  { %vm2807_vm1 = vmmov %vm2796_vm0 }
 0x375   :  { %vm2808_vm4 = vmmov %vm2796_vm0  ;;  %p1813_p13 = por %p1812_p12, %p1811_p11 }
 0x376   :  { %vm2809_vm11 = vmmov %vm2796_vm0 }
 0x377   :  { %vm2810_vm14 = vmmov %vm2796_vm0  ;;  %p1814_p0 = pnand %p1813_p13, %p1807_p10 }
 0x378   :  { %vm2811_vm8 = vmmov %vm2796_vm0 }
 0x3e3   :  { %v1043_v37 = vpop.xlane.xlu1 %1042  ;;  %v1038_v0 = vpop.xlane.xlu0 %1037 }
 0x3e4   :  { %1728 = vlog2.f32 %v1043_v37 }
 0x3e5   :  { %1730 = vlog2.f32 %v1038_v0 }
 0x3e7   :  { %v1053_v42 = vpop.xlane.xlu1 %1052  ;;  %v1048_v52 = vpop.xlane.xlu0 %1047 }
 0x3e8   :  { %1732 = vlog2.f32 %v1053_v42 }
 0x3e9   :  { %1734 = vlog2.f32 %v1048_v52 }
 0x3eb   :  { %v1174_v17 = vpop.xlane.xlu1 %1173  ;;  %v1169_v53 = vpop.xlane.xlu0 %1168 }
 0x3ec   :  { %1736 = vlog2.f32 %v1174_v17 }
 0x3ed   :  { %1738 = vlog2.f32 %v1169_v53 }
 0x3ee   :  { %v1729_v5 = vpop.eup %1728 }
 0x3ef   :  { %v1731_v27 = vpop.eup %1730  ;;  %v1057_v18 = vmul.f32 0.6931472, %v1729_v5 }
 0x3f0   :  { %v1055_v19 = vmul.f32 0.6931472, %v1731_v27 }
 0x3f1   :  { %v1063_v44 = vadd.f32 %v1057_v18, %v2499_v39 }
 0x3f2   :  { %v1733_v25 = vpop.eup %1732  ;;  %v1062_v6 = vadd.f32 %v1055_v19, %v2473_v57 }
 0x3f3   :  { %v1735_v8 = vpop.eup %1734  ;;  %1068 = vst.msk [vmem:[#allocation4 + $0x8] sm:$0xff] %vm2802_vm5, %v1063_v44  ;;  %v1061_v13 = vmul.f32 0.6931472, %v1733_v25 }
 0x3f4   :  { %1067 = vst.msk [vmem:[#allocation4] sm:$0xff] %vm2803_vm7, %v1062_v6  ;;  %v1059_v36 = vmul.f32 0.6931472, %v1735_v8 }
 0x3f5   :  { %v1065_v22 = vadd.f32 %v1061_v13, %v2477_v63 }
 0x3f6   :  { %v1737_v29 = vpop.eup %1736  ;;  %v1064_v14 = vadd.f32 %v1059_v36, %v2475_v60 }
 0x3f7   :  { %v1739_v47 = vpop.eup %1738  ;;  %1070 = vst.msk [vmem:[#allocation4 + $0x18] sm:$0xff] %vm2804_vm9, %v1065_v22  ;;  %v1182_v16 = vmul.f32 0.6931472, %v1737_v29 }
 0x3f8   :  { %1069 = vst.msk [vmem:[#allocation4 + $0x10] sm:$0xff] %vm2805_vm6, %v1064_v14  ;;  %v1180_v39 = vmul.f32 0.6931472, %v1739_v47 }
 0x3f9   :  { %v1186_v57 = vadd.f32 %v1182_v16, %v2541_v15 }
 0x3fa   :  { %v1185_v50 = vadd.f32 %v1180_v39, %v2511_v45  ;;  %v1220_v7 = vld [vmem:[#allocation4 + $0x8] sm:$0xff] }
 0x3fb   :  { %1191 = vst.msk [vmem:[#allocation5 + $0x18] sm:$0xff] %vm2806_vm15, %v1186_v57  ;;  %v1219_v21 = vld [vmem:[#allocation4] sm:$0xff] }
 0x3fc   :  { %1224 = vst.msk [vmem:[#allocation12 + $0x8] sm:$0xff] %vm2807_vm1, %v1220_v7 }
 0x3fd   :  { %1190 = vst.msk [vmem:[#allocation5 + $0x10] sm:$0xff] %vm2808_vm4, %v1185_v50 }
 0x3fe   :  { %1223 = vst.msk [vmem:[#allocation12] sm:$0xff] %vm2809_vm11, %v1219_v21  ;;  %v1222_v60 = vld [vmem:[#allocation4 + $0x18] sm:$0xff] }
 0x3ff   :  { %v1221_v63 = vld [vmem:[#allocation4 + $0x10] sm:$0xff]  ;;  %1226 = vst.msk [vmem:[#allocation12 + $0x18] sm:$0xff] %vm2810_vm14, %v1222_v60 }
 0x400   :  { %1225 = vst.msk [vmem:[#allocation12 + $0x10] sm:$0xff] %vm2811_vm8, %v1221_v63 }
 0x401   :  { %1817 = shalt.err (!%p1814_p0)
}
 0x402   :  { %s1818_s7 = scalar_lea.hbm %s2679_s3, 512 }
 0x403   :  { %p1819_p1 = scmp.ne.s32.totalorder %s2679_s3, %s1818_s7  ;;  %p1822_p2 = scmp.lt.u32.totalorder %s1818_s7, %s2679_s3 }
 0x405   :  { %p1824_p3 = pnand %p1822_p2, %p1819_p1 }
 0x407   :  { %1827 = shalt.err (!%p1824_p3)
}
 0x408   :  { %1258 = dma.vmem_to_hbm [thread:$0]  %s1253_s27, 512, %s2679_s3, [#allocation13], %s1859_s25, %s1859_s25, %s1860_s26   ;;  %v1230_v45 = vld [vmem:[#allocation5 + $0x18] sm:$0xff]  ;;  %v1229_v15 = vld [vmem:[#allocation5 + $0x10] sm:$0xff]  ;;  %vm2812_vm13 = vmmov %vm2796_vm0 }
 0x409   :  { %1234 = vst.msk [vmem:[#allocation14 + $0x18] sm:$0xff] %vm2796_vm0, %v1230_v45  ;;  %s1828_s13 = scalar_lea.vmem %s1265_s29, 512  ;;  %p1833_p5 = scmp.lt.s32.totalorder %s1265_s29, %s1265_s29 }
 0x40a   :  { %1233 = vst.msk [vmem:[#allocation14 + $0x10] sm:$0xff] %vm2812_vm13, %v1229_v15  ;;  %p1829_p4 = scmp.ne.s32.totalorder %s1265_s29, %s1828_s13  ;;  %p1834_p6 = scmp.lt.s32.totalorder %s1828_s13, %s1828_s13 }
 0x40c   :  { %p1835_p7 = por %p1834_p6, %p1833_p5 }
 0x40e   :  { %p1836_p8 = pnand %p1835_p7, %p1829_p4 }
 0x410   :  { %1839 = shalt.err (!%p1836_p8)
}
 0x411   :  { %s1840_s15 = scalar_lea.hbm %s2680_s4, 512 }
 0x412   :  { %p1841_p9 = scmp.ne.s32.totalorder %s2680_s4, %s1840_s15  ;;  %p1844_p10 = scmp.lt.u32.totalorder %s1840_s15, %s2680_s4 }
 0x414   :  { %p1846_p11 = pnand %p1844_p10, %p1841_p9 }
 0x416   :  { %1849 = shalt.err (!%p1846_p11)
}
 0x417   :  { %1270 = dma.vmem_to_hbm [thread:$0]  %s1265_s29, 512, %s2680_s4, [#allocation13], %s1859_s25, %s1859_s25, %s1860_s26  }
 0x418   :  { %1854 = dma.done.wait [#allocation8], 512  }
 0x419   :  { %1855 = vsyncadd [#allocation8], 4294966784 }
 0x41a   :  { %1856 = dma.done.wait [#allocation13], 1024  }
 0x41b   :  { %1857 = vsyncadd [#allocation13], 4294966272 }
 0x41c   :  { %1280 = vsyncpa [#allocation7], 1 }
 0x41d   :  { %1281 = vsyncpa [#allocation10], 1 }
 0x41e   :  { %1282 = vsyncpa [#allocation8], 1 }
 0x41f   :  { %1283 = vsyncpa [#allocation13], 1 }

</bundles_post_ra>
